<compile_context>
chip_gen: v5e
topology: v5e:2x2
jax: 0.10.0
libtpu: 0.0.40
codegen_flags: <defaults>
</compile_context>

<pallas_src>
import functools
import math

import jax
import jax.numpy as jnp
from jax.experimental import pallas as pl
from jax.experimental.pallas import tpu as pltpu

LN_EPS = 1e-5  # torch.nn.LayerNorm default


def _layernorm(x, gamma, beta):
    # One-pass stats (sum and sum-of-squares): half the cross-lane reductions.
    # Small numeric deviation from torch's centered two-pass variance when
    # |mean| >> std; fine for post-matmul activations.
    n = x.shape[-1]
    s = jnp.sum(x, axis=-1, keepdims=True)
    ss = jnp.sum(x * x, axis=-1, keepdims=True)
    mean = s * (1.0 / n)
    var = ss * (1.0 / n) - mean * mean
    inv = jax.lax.rsqrt(var + LN_EPS)
    return (x - mean) * inv * gamma + beta


def _gelu(x, approximate):
    if approximate:
        # tanh-approx GELU: transcendental goes to the EUP (separate bundle
        # slot), cutting VALU work vs. the erf polynomial on v6e/v7x.
        return jax.nn.gelu(x, approximate=True)
    # Exact erf GELU == torch.nn.GELU() default.
    return 0.5 * x * (1.0 + jax.lax.erf(x * (1.0 / math.sqrt(2.0))))


def projector_kernel(
    x_ref,
    w_in_ref, b_in_ref,
    bw1_ref, bw2_ref, bvec_ref,        # bvec: (6, hidden) = bb1,bg1,bB1,bb2,bg2,bB2
    hn_g_ref, hn_b_ref,
    w3_ref, b3_ref,
    w4_ref, b4_ref,
    ln_g_ref, ln_b_ref,
    out_ref,
    h_ref,                              # persistent VMEM scratch: residual carry, f32
    *, approximate_gelu,
):
    k = pl.program_id(1)
    wdt = bw1_ref.dtype  # streamed weight dtype (bf16)

    # ---- prologue: input_proj (first block step of this row tile only)
    @pl.when(k == 0)
    def _():
        h_ref[...] = (
            jnp.dot(x_ref[...].astype(w_in_ref.dtype), w_in_ref[...],
                    preferred_element_type=jnp.float32)
            + b_in_ref[...])

    # per-block packed vectors (static slices of the (6, hidden) tile)
    bb1 = bvec_ref[0:1, :]
    bg1 = bvec_ref[1:2, :]
    bB1 = bvec_ref[2:3, :]
    bb2 = bvec_ref[3:4, :]
    bg2 = bvec_ref[4:5, :]
    bB2 = bvec_ref[5:6, :]

    # ---- residual block k (only this block's weights are resident; the
    #      pipeline prefetches block k+1's weights while the MXU runs)
    h = h_ref[...]
    y = (jnp.dot(h.astype(wdt), bw1_ref[...],
                 preferred_element_type=jnp.float32) + bb1)
    y = _layernorm(y, bg1, bB1)
    y = _gelu(y, approximate_gelu)
    y = (jnp.dot(y.astype(wdt), bw2_ref[...],
                 preferred_element_type=jnp.float32) + bb2)
    y = _layernorm(y, bg2, bB2)
    h = h + y
    h_ref[...] = h

    # ---- epilogue: hidden_norm -> Linear -> GELU -> Linear -> layer_norm
    @pl.when(k == pl.num_programs(1) - 1)
    def _():
        z = _layernorm(h, hn_g_ref[...], hn_b_ref[...])
        z = (jnp.dot(z.astype(w3_ref.dtype), w3_ref[...],
                     preferred_element_type=jnp.float32) + b3_ref[...])
        z = _gelu(z, approximate_gelu)
        z = (jnp.dot(z.astype(w4_ref.dtype), w4_ref[...],
                     preferred_element_type=jnp.float32) + b4_ref[...])
        out_ref[...] = _layernorm(z, ln_g_ref[...], ln_b_ref[...]).astype(out_ref.dtype)


# ---------------------------------------------------------------------------
# VMEM budgeting / tile selection
# ---------------------------------------------------------------------------
def _vmem_limit_bytes():
    cap = 64 * 1024 * 1024
    try:
        info = pltpu.get_tpu_info()
        cap = int(getattr(info, "vmem_capacity_bytes", cap))
    except Exception:
        pass
    # Leave ~1/8 headroom for Mosaic-internal scratch (esp. v7x's 64 MiB):
    # ~112 MiB on v5e/v6e, ~56 MiB on v7x.
    return (cap * 7) // 8


def _vmem_footprint_bytes(tm, input_dim, hidden, half, out_dim, wbytes, const_bufs):
    x_tiles = 2 * tm * input_dim * wbytes                 # double-buffered x tile
    out_tiles = 2 * tm * out_dim * 4                      # double-buffered out tile
    carry = tm * hidden * 4                               # persistent residual carry
    temps = 3 * tm * hidden * 4                           # live f32 intermediates
    blk = 2 * (2 * hidden * hidden * wbytes + 6 * hidden * 4)  # streamed block weights (2 bufs)
    const = const_bufs * (
        (input_dim * hidden + hidden * half + half * out_dim) * wbytes
        + (3 * hidden + half + 3 * out_dim) * 4)
    return x_tiles + out_tiles + carry + temps + blk + const


def _pick_tm(B, footprint_fn, budget):
    # Prefer the largest multiple of 128 (MXU-friendly on all chips) that both
    # divides B and fits the VMEM budget; fall back to smaller divisors for
    # tiny batches.
    candidates = (1024, 896, 768, 640, 512, 384, 256, 128, 64, 32, 16, 8)
    divisors = [t for t in candidates if B % t == 0]
    for t in divisors:
        if footprint_fn(t) <= budget:
            return t
    if divisors:
        return divisors[-1]
    return B  # odd/tiny batch: single un-tiled row block


# ---------------------------------------------------------------------------
# Wrapper
# ---------------------------------------------------------------------------
def projector_pallas(x, params, *, tm=None, approximate_gelu=True):
    """x: (B, input_dim).  params: dict of stacked weights (big matrices may
    be bf16; biases / LN params f32).  Output: (B, output_dim) f32."""
    B, input_dim = x.shape
    hidden = params["w_in"].shape[1]
    half = params["w3"].shape[1]
    out_dim = params["w4"].shape[1]
    num_blocks = params["bw1"].shape[0]

    wdt = params["w_in"].dtype
    wbytes = jnp.dtype(wdt).itemsize
    if x.dtype != wdt:
        # Stream x in the weight dtype (bf16): it is cast for the first matmul
        # anyway; halves its HBM traffic and double-buffer footprint.
        x = x.astype(wdt)

    # Pack the six per-block (1, hidden) vectors -> (num_blocks, 6, hidden):
    # one DMA / one double buffer per grid step instead of six.
    bvec = jnp.concatenate(
        [params["bb1"], params["bg1"], params["bB1"],
         params["bb2"], params["bg2"], params["bB2"]],
        axis=1).astype(jnp.float32)

    args = (
        x,
        params["w_in"], params["b_in"],
        params["bw1"], params["bw2"], bvec,
        params["hn_g"], params["hn_b"],
        params["w3"], params["b3"],
        params["w4"], params["b4"],
        params["ln_g"], params["ln_b"],
    )

    nbytes = lambda a: int(a.size) * jnp.dtype(a.dtype).itemsize
    block_stream_bytes = nbytes(params["bw1"]) + nbytes(params["bw2"]) + nbytes(bvec)
    const_bytes = sum(nbytes(a) for a in (
        params["w_in"], params["b_in"], params["hn_g"], params["hn_b"],
        params["w3"], params["b3"], params["w4"], params["b4"],
        params["ln_g"], params["ln_b"]))

    flops = 2 * B * (input_dim * hidden
                     + num_blocks * 2 * hidden * hidden
                     + hidden * half + half * out_dim)
    transcendentals = B * (num_blocks * hidden + half)  # GELU

    vmem_limit = _vmem_limit_bytes()
    budget = int(vmem_limit * 0.9)

    kernel_fn = functools.partial(projector_kernel,
                                  approximate_gelu=approximate_gelu)

    last_err = None
    # First attempt: single-buffer the constant-index inputs (Buffered(1)).
    # If this JAX version rejects pipeline_mode / buffer_count=1, fall back to
    # default double-buffered specs (and re-pick tm for the larger footprint).
    for single_buf in (True, False):
        const_bufs = 1 if single_buf else 2
        if tm is None:
            tm_eff = _pick_tm(
                B,
                lambda t: _vmem_footprint_bytes(
                    t, input_dim, hidden, half, out_dim, wbytes, const_bufs),
                budget)
        else:
            tm_eff = tm
        assert B % tm_eff == 0, (B, tm_eff)
        row_tiles = B // tm_eff
        grid = (row_tiles, num_blocks)

        row = lambda i, k: (i, 0)        # per-row-tile, constant across k
        blk = lambda i, k: (k, 0, 0)     # per-residual-block (streamed)
        cidx = lambda i, k: (0, 0)       # resident constants

        def cspec(shape):
            if single_buf:
                return pl.BlockSpec(shape, cidx, pipeline_mode=pl.Buffered(1))
            return pl.BlockSpec(shape, cidx)

        try:
            in_specs = [
                pl.BlockSpec((tm_eff, input_dim), row),       # x
                cspec((input_dim, hidden)),                   # w_in
                cspec((1, hidden)),                           # b_in
                pl.BlockSpec((None, hidden, hidden), blk),    # bw1[k]
                pl.BlockSpec((None, hidden, hidden), blk),    # bw2[k]
                pl.BlockSpec((None, 6, hidden), blk),         # packed block vecs[k]
                cspec((1, hidden)),                           # hn_g
                cspec((1, hidden)),                           # hn_b
                cspec((hidden, half)),                        # w3
                cspec((1, half)),                             # b3
                cspec((half, out_dim)),                       # w4
                cspec((1, out_dim)),                          # b4
                cspec((1, out_dim)),                          # ln_g
                cspec((1, out_dim)),                          # ln_b
            ]
            out_spec = pl.BlockSpec((tm_eff, out_dim), row)

            # Real HBM traffic under this schedule: block weights are
            # re-streamed once per row tile; constants fetched once.
            bytes_accessed = (row_tiles * block_stream_bytes + const_bytes
                              + nbytes(x) + B * out_dim * 4)

            call = pl.pallas_call(
                kernel_fn,
                out_shape=jax.ShapeDtypeStruct((B, out_dim), jnp.float32),
                grid=grid,
                in_specs=in_specs,
                out_specs=out_spec,
                scratch_shapes=[pltpu.VMEM((tm_eff, hidden), jnp.float32)],
                compiler_params=pltpu.CompilerParams(
                    dimension_semantics=("parallel", "arbitrary"),
                    vmem_limit_bytes=int(vmem_limit)),
                cost_estimate=pl.CostEstimate(
                    flops=int(flops),
                    transcendentals=int(transcendentals),
                    bytes_accessed=int(bytes_accessed)),
            )
            return call(*args)
        except Exception as e:  # version-dependent pipeline_mode fallback
            last_err = e
    raise last_err


# ---------------------------------------------------------------------------
# Pure-JAX reference (verification)
# ---------------------------------------------------------------------------
def projector_reference(x, params, *, matmul_dtype=None, approximate_gelu=False):
    """matmul_dtype=jnp.bfloat16 emulates the kernel's bf16-weight matmuls
    (f32 accumulation); approximate_gelu matches the kernel's GELU choice."""
    def mm(a, w):
        if matmul_dtype is not None:
            a = a.astype(matmul_dtype)
            w = w.astype(matmul_dtype)
        return jnp.dot(a, w, preferred_element_type=jnp.float32)

    h = mm(x, params["w_in"]) + params["b_in"]
    nb = params["bw1"].shape[0]
    for i in range(nb):
        y = mm(h, params["bw1"][i]) + params["bb1"][i]
        y = _layernorm(y, params["bg1"][i], params["bB1"][i])
        y = _gelu(y, approximate_gelu)
        y = mm(y, params["bw2"][i]) + params["bb2"][i]
        y = _layernorm(y, params["bg2"][i], params["bB2"][i])
        h = h + y
    h = _layernorm(h, params["hn_g"], params["hn_b"])
    h = mm(h, params["w3"]) + params["b3"]
    h = _gelu(h, approximate_gelu)
    h = mm(h, params["w4"]) + params["b4"]
    return _layernorm(h, params["ln_g"], params["ln_b"])


def init_params(key, input_dim, hidden_dim, output_dim, num_blocks):
    """Deterministic synthetic parameters (f32 master copy)."""
    half = hidden_dim // 2
    keys = jax.random.split(key, 16)
    s = 0.05

    def w(k, shape):
        return (s * jax.random.normal(k, shape)).astype(jnp.float32)

    def ln_pair(k, dim):
        kg, kb = jax.random.split(k)
        g = (1.0 + 0.1 * jax.random.normal(kg, (1, dim))).astype(jnp.float32)
        b = (0.1 * jax.random.normal(kb, (1, dim))).astype(jnp.float32)
        return g, b

    bg1, bB1, bg2, bB2 = [], [], [], []
    k_ln = jax.random.split(keys[10], num_blocks * 2)
    for i in range(num_blocks):
        g1, b1 = ln_pair(k_ln[2 * i], hidden_dim)
        g2, b2 = ln_pair(k_ln[2 * i + 1], hidden_dim)
        bg1.append(g1); bB1.append(b1); bg2.append(g2); bB2.append(b2)

    hn_g, hn_b = ln_pair(keys[11], hidden_dim)
    ln_g, ln_b = ln_pair(keys[12], output_dim)

    return {
        "w_in": w(keys[0], (input_dim, hidden_dim)),
        "b_in": w(keys[1], (1, hidden_dim)),
        "bw1": w(keys[2], (num_blocks, hidden_dim, hidden_dim)),
        "bb1": w(keys[3], (num_blocks, 1, hidden_dim)),
        "bw2": w(keys[4], (num_blocks, hidden_dim, hidden_dim)),
        "bb2": w(keys[5], (num_blocks, 1, hidden_dim)),
        "bg1": jnp.stack(bg1), "bB1": jnp.stack(bB1),
        "bg2": jnp.stack(bg2), "bB2": jnp.stack(bB2),
        "hn_g": hn_g, "hn_b": hn_b,
        "w3": w(keys[6], (hidden_dim, half)),
        "b3": w(keys[7], (1, half)),
        "w4": w(keys[8], (half, output_dim)),
        "b4": w(keys[9], (1, output_dim)),
        "ln_g": ln_g, "ln_b": ln_b,
    }


def to_kernel_params(params, weight_dtype=jnp.bfloat16):
    """Cast only the big streamed matrices; biases / LN params stay f32."""
    kp = dict(params)
    for name in ("w_in", "bw1", "bw2", "w3", "w4"):
        kp[name] = params[name].astype(weight_dtype)
    return kp


if __name__ == "__main__":
    # Small shapes consistent with the module (real: 768 -> 2048 -> 512, 6 blocks).
    B = 16
    INPUT_DIM = 32
    HIDDEN_DIM = 64
    OUTPUT_DIM = 32
    NUM_BLOCKS = 4

    key = jax.random.PRNGKey(0)
    k_x, k_p = jax.random.split(key)
    x = jax.random.normal(k_x, (B, INPUT_DIM), dtype=jnp.float32)
    params = init_params(k_p, INPUT_DIM, HIDDEN_DIM, OUTPUT_DIM, NUM_BLOCKS)
    kparams = to_kernel_params(params, jnp.bfloat16)

    out = jax.block_until_ready(projector_pallas(x, kparams, approximate_gelu=True))

    # Tight check vs. a reference emulating the kernel's bf16 matmuls + tanh
    # GELU; loose sanity check vs. the full-f32 exact-erf (torch-equivalent)
    # reference.
    ref_match = jax.block_until_ready(projector_reference(
        x, params, matmul_dtype=jnp.bfloat16, approximate_gelu=True))
    ref_f32 = jax.block_until_ready(projector_reference(
        x, params, matmul_dtype=None, approximate_gelu=False))

    assert out.shape == (B, OUTPUT_DIM)
    err_tight = float(jnp.max(jnp.abs(out - ref_match)))
    err_loose = float(jnp.max(jnp.abs(out - ref_f32)))
    assert err_tight < 3e-3, f"matching reference mismatch: {err_tight}"
    assert err_loose < 1e-1, f"f32 reference mismatch: {err_loose}"

    print("KERNEL_OK")
</pallas_src>

<mosaic_0001>
module attributes {stable_mosaic.version = 11 : i64} {
  func.func @projector_kernel(%arg0: i32, %arg1: i32, %arg2: memref<16x32xbf16, #tpu.memory_space<vmem>>, %arg3: memref<32x64xbf16, #tpu.memory_space<vmem>>, %arg4: memref<1x64xf32, #tpu.memory_space<vmem>>, %arg5: memref<1x64x64xbf16, #tpu.memory_space<vmem>>, %arg6: memref<1x64x64xbf16, #tpu.memory_space<vmem>>, %arg7: memref<1x6x64xf32, #tpu.memory_space<vmem>>, %arg8: memref<1x64xf32, #tpu.memory_space<vmem>>, %arg9: memref<1x64xf32, #tpu.memory_space<vmem>>, %arg10: memref<64x32xbf16, #tpu.memory_space<vmem>>, %arg11: memref<1x32xf32, #tpu.memory_space<vmem>>, %arg12: memref<32x32xbf16, #tpu.memory_space<vmem>>, %arg13: memref<1x32xf32, #tpu.memory_space<vmem>>, %arg14: memref<1x32xf32, #tpu.memory_space<vmem>>, %arg15: memref<1x32xf32, #tpu.memory_space<vmem>>, %arg16: memref<16x32xf32, #tpu.memory_space<vmem>>, %arg17: memref<16x64xf32, #tpu.memory_space<vmem>>) attributes {dimension_semantics = [#tpu.dimension_semantics<parallel>, #tpu.dimension_semantics<arbitrary>], iteration_bounds = array<i64: 1, 4>, scalar_prefetch = 0 : i64, scratch_operands = 1 : i64, tpu.core_type = #tpu.core_type<tc>, window_params = [{transform_indices = @transform_0, window_bounds = array<i64: 16, 32>}, {pipeline_mode = #tpu.pipeline_mode<synchronous>, transform_indices = @transform_1, window_bounds = array<i64: 32, 64>}, {pipeline_mode = #tpu.pipeline_mode<synchronous>, transform_indices = @transform_2, window_bounds = array<i64: 1, 64>}, {transform_indices = @transform_3, window_bounds = array<i64: 1, 64, 64>}, {transform_indices = @transform_4, window_bounds = array<i64: 1, 64, 64>}, {transform_indices = @transform_5, window_bounds = array<i64: 1, 6, 64>}, {pipeline_mode = #tpu.pipeline_mode<synchronous>, transform_indices = @transform_6, window_bounds = array<i64: 1, 64>}, {pipeline_mode = #tpu.pipeline_mode<synchronous>, transform_indices = @transform_7, window_bounds = array<i64: 1, 64>}, {pipeline_mode = #tpu.pipeline_mode<synchronous>, transform_indices = @transform_8, window_bounds = array<i64: 64, 32>}, {pipeline_mode = #tpu.pipeline_mode<synchronous>, transform_indices = @transform_9, window_bounds = array<i64: 1, 32>}, {pipeline_mode = #tpu.pipeline_mode<synchronous>, transform_indices = @transform_10, window_bounds = array<i64: 32, 32>}, {pipeline_mode = #tpu.pipeline_mode<synchronous>, transform_indices = @transform_11, window_bounds = array<i64: 1, 32>}, {pipeline_mode = #tpu.pipeline_mode<synchronous>, transform_indices = @transform_12, window_bounds = array<i64: 1, 32>}, {pipeline_mode = #tpu.pipeline_mode<synchronous>, transform_indices = @transform_13, window_bounds = array<i64: 1, 32>}, {transform_indices = @transform_14, window_bounds = array<i64: 16, 32>}]} {
    %c0_i32 = arith.constant 0 : i32
    %0 = arith.cmpi eq, %arg1, %c0_i32 : i32
    %1 = arith.extui %0 : i1 to i32
    %c0_i32_0 = arith.constant 0 : i32
    %2 = arith.cmpi ne, %1, %c0_i32_0 : i32
    scf.if %2 {
      %c0_39 = arith.constant 0 : index
      %c0_40 = arith.constant 0 : index
      %90 = vector.load %arg2[%c0_39, %c0_40] : memref<16x32xbf16, #tpu.memory_space<vmem>>, vector<16x32xbf16>
      %c0_41 = arith.constant 0 : index
      %c0_42 = arith.constant 0 : index
      %91 = vector.load %arg3[%c0_41, %c0_42] : memref<32x64xbf16, #tpu.memory_space<vmem>>, vector<32x64xbf16>
      %cst_43 = arith.constant dense<0.000000e+00> : vector<16x64xf32>
      %92 = tpu.matmul %90, %91, %cst_43 {dimension_numbers = #tpu.dot_dimension_numbers<[1], [0], [0], [1], [0, 0, 1, 1], [], []>} : vector<16x32xbf16>, vector<32x64xbf16>, vector<16x64xf32> -> vector<16x64xf32>
      %c0_44 = arith.constant 0 : index
      %c0_45 = arith.constant 0 : index
      %93 = vector.load %arg4[%c0_44, %c0_45] : memref<1x64xf32, #tpu.memory_space<vmem>>, vector<1x64xf32>
      %94 = vector.broadcast %93 : vector<1x64xf32> to vector<16x64xf32>
      %95 = arith.addf %92, %94 : vector<16x64xf32>
      %c0_46 = arith.constant 0 : index
      %c0_47 = arith.constant 0 : index
      %96 = vector.load %arg17[%c0_46, %c0_47] : memref<16x64xf32, #tpu.memory_space<vmem>>, vector<16x64xf32>
      tpu.vector_store %arg17[%c0_46, %c0_47], %95 {strides = array<i32>} : memref<16x64xf32, #tpu.memory_space<vmem>>, vector<16x64xf32>,
    } else {
    }
    %c0 = arith.constant 0 : index
    %c0_1 = arith.constant 0 : index
    %c0_2 = arith.constant 0 : index
    %3 = vector.load %arg7[%c0, %c0_1, %c0_2] : memref<1x6x64xf32, #tpu.memory_space<vmem>>, vector<1x1x64xf32>
    %4 = vector.shape_cast %3 : vector<1x1x64xf32> to vector<1x64xf32>
    %c0_3 = arith.constant 0 : index
    %c1 = arith.constant 1 : index
    %c0_4 = arith.constant 0 : index
    %5 = vector.load %arg7[%c0_3, %c1, %c0_4] : memref<1x6x64xf32, #tpu.memory_space<vmem>>, vector<1x1x64xf32>
    %6 = vector.shape_cast %5 : vector<1x1x64xf32> to vector<1x64xf32>
    %c0_5 = arith.constant 0 : index
    %c2 = arith.constant 2 : index
    %c0_6 = arith.constant 0 : index
    %7 = vector.load %arg7[%c0_5, %c2, %c0_6] : memref<1x6x64xf32, #tpu.memory_space<vmem>>, vector<1x1x64xf32>
    %8 = vector.shape_cast %7 : vector<1x1x64xf32> to vector<1x64xf32>
    %c0_7 = arith.constant 0 : index
    %c3 = arith.constant 3 : index
    %c0_8 = arith.constant 0 : index
    %9 = vector.load %arg7[%c0_7, %c3, %c0_8] : memref<1x6x64xf32, #tpu.memory_space<vmem>>, vector<1x1x64xf32>
    %10 = vector.shape_cast %9 : vector<1x1x64xf32> to vector<1x64xf32>
    %c0_9 = arith.constant 0 : index
    %c4 = arith.constant 4 : index
    %c0_10 = arith.constant 0 : index
    %11 = vector.load %arg7[%c0_9, %c4, %c0_10] : memref<1x6x64xf32, #tpu.memory_space<vmem>>, vector<1x1x64xf32>
    %12 = vector.shape_cast %11 : vector<1x1x64xf32> to vector<1x64xf32>
    %c0_11 = arith.constant 0 : index
    %c5 = arith.constant 5 : index
    %c0_12 = arith.constant 0 : index
    %13 = vector.load %arg7[%c0_11, %c5, %c0_12] : memref<1x6x64xf32, #tpu.memory_space<vmem>>, vector<1x1x64xf32>
    %14 = vector.shape_cast %13 : vector<1x1x64xf32> to vector<1x64xf32>
    %c0_13 = arith.constant 0 : index
    %c0_14 = arith.constant 0 : index
    %15 = vector.load %arg17[%c0_13, %c0_14] : memref<16x64xf32, #tpu.memory_space<vmem>>, vector<16x64xf32>
    %16 = arith.truncf %15 : vector<16x64xf32> to vector<16x64xbf16>
    %c0_15 = arith.constant 0 : index
    %c0_16 = arith.constant 0 : index
    %c0_17 = arith.constant 0 : index
    %17 = vector.load %arg5[%c0_15, %c0_16, %c0_17] : memref<1x64x64xbf16, #tpu.memory_space<vmem>>, vector<1x64x64xbf16>
    %18 = vector.shape_cast %17 : vector<1x64x64xbf16> to vector<64x64xbf16>
    %cst = arith.constant dense<0.000000e+00> : vector<16x64xf32>
    %19 = tpu.matmul %16, %18, %cst {dimension_numbers = #tpu.dot_dimension_numbers<[1], [0], [0], [1], [0, 0, 1, 1], [], []>} : vector<16x64xbf16>, vector<64x64xbf16>, vector<16x64xf32> -> vector<16x64xf32>
    %20 = vector.broadcast %4 : vector<1x64xf32> to vector<16x64xf32>
    %21 = arith.addf %19, %20 : vector<16x64xf32>
    %cst_18 = arith.constant dense<0.000000e+00> : vector<16xf32>
    %22 = vector.multi_reduction <add>, %21, %cst_18 [1] : vector<16x64xf32> to vector<16xf32>
    %23 = vector.shape_cast %22 : vector<16xf32> to vector<16x1xf32>
    %24 = arith.mulf %21, %21 : vector<16x64xf32>
    %cst_19 = arith.constant dense<0.000000e+00> : vector<16xf32>
    %25 = vector.multi_reduction <add>, %24, %cst_19 [1] : vector<16x64xf32> to vector<16xf32>
    %26 = vector.shape_cast %25 : vector<16xf32> to vector<16x1xf32>
    %cst_20 = arith.constant 1.562500e-02 : f32
    %27 = vector.broadcast %cst_20 : f32 to vector<16x1xf32>
    %28 = arith.mulf %23, %27 : vector<16x1xf32>
    %cst_21 = arith.constant 1.562500e-02 : f32
    %29 = vector.broadcast %cst_21 : f32 to vector<16x1xf32>
    %30 = arith.mulf %26, %29 : vector<16x1xf32>
    %31 = arith.mulf %28, %28 : vector<16x1xf32>
    %32 = arith.subf %30, %31 : vector<16x1xf32>
    %cst_22 = arith.constant 9.99999974E-6 : f32
    %33 = vector.broadcast %cst_22 : f32 to vector<16x1xf32>
    %34 = arith.addf %32, %33 : vector<16x1xf32>
    %35 = math.rsqrt %34 : vector<16x1xf32>
    %36 = vector.broadcast %28 : vector<16x1xf32> to vector<16x64xf32>
    %37 = arith.subf %21, %36 : vector<16x64xf32>
    %38 = vector.broadcast %35 : vector<16x1xf32> to vector<16x64xf32>
    %39 = arith.mulf %37, %38 : vector<16x64xf32>
    %40 = vector.broadcast %6 : vector<1x64xf32> to vector<16x64xf32>
    %41 = arith.mulf %39, %40 : vector<16x64xf32>
    %42 = vector.broadcast %8 : vector<1x64xf32> to vector<16x64xf32>
    %43 = arith.addf %41, %42 : vector<16x64xf32>
    %44 = arith.mulf %43, %43 : vector<16x64xf32>
    %45 = arith.mulf %43, %44 : vector<16x64xf32>
    %cst_23 = arith.constant 4.471500e-02 : f32
    %46 = vector.broadcast %cst_23 : f32 to vector<16x64xf32>
    %47 = arith.mulf %46, %45 : vector<16x64xf32>
    %48 = arith.addf %43, %47 : vector<16x64xf32>
    %cst_24 = arith.constant 0.797884583 : f32
    %49 = vector.broadcast %cst_24 : f32 to vector<16x64xf32>
    %50 = arith.mulf %49, %48 : vector<16x64xf32>
    %51 = math.tanh %50 : vector<16x64xf32>
    %cst_25 = arith.constant 1.000000e+00 : f32
    %52 = vector.broadcast %cst_25 : f32 to vector<16x64xf32>
    %53 = arith.addf %52, %51 : vector<16x64xf32>
    %cst_26 = arith.constant 5.000000e-01 : f32
    %54 = vector.broadcast %cst_26 : f32 to vector<16x64xf32>
    %55 = arith.mulf %54, %53 : vector<16x64xf32>
    %56 = arith.mulf %43, %55 : vector<16x64xf32>
    %57 = arith.truncf %56 : vector<16x64xf32> to vector<16x64xbf16>
    %c0_27 = arith.constant 0 : index
    %c0_28 = arith.constant 0 : index
    %c0_29 = arith.constant 0 : index
    %58 = vector.load %arg6[%c0_27, %c0_28, %c0_29] : memref<1x64x64xbf16, #tpu.memory_space<vmem>>, vector<1x64x64xbf16>
    %59 = vector.shape_cast %58 : vector<1x64x64xbf16> to vector<64x64xbf16>
    %cst_30 = arith.constant dense<0.000000e+00> : vector<16x64xf32>
    %60 = tpu.matmul %57, %59, %cst_30 {dimension_numbers = #tpu.dot_dimension_numbers<[1], [0], [0], [1], [0, 0, 1, 1], [], []>} : vector<16x64xbf16>, vector<64x64xbf16>, vector<16x64xf32> -> vector<16x64xf32>
    %61 = vector.broadcast %10 : vector<1x64xf32> to vector<16x64xf32>
    %62 = arith.addf %60, %61 : vector<16x64xf32>
    %cst_31 = arith.constant dense<0.000000e+00> : vector<16xf32>
    %63 = vector.multi_reduction <add>, %62, %cst_31 [1] : vector<16x64xf32> to vector<16xf32>
    %64 = vector.shape_cast %63 : vector<16xf32> to vector<16x1xf32>
    %65 = arith.mulf %62, %62 : vector<16x64xf32>
    %cst_32 = arith.constant dense<0.000000e+00> : vector<16xf32>
    %66 = vector.multi_reduction <add>, %65, %cst_32 [1] : vector<16x64xf32> to vector<16xf32>
    %67 = vector.shape_cast %66 : vector<16xf32> to vector<16x1xf32>
    %cst_33 = arith.constant 1.562500e-02 : f32
    %68 = vector.broadcast %cst_33 : f32 to vector<16x1xf32>
    %69 = arith.mulf %64, %68 : vector<16x1xf32>
    %cst_34 = arith.constant 1.562500e-02 : f32
    %70 = vector.broadcast %cst_34 : f32 to vector<16x1xf32>
    %71 = arith.mulf %67, %70 : vector<16x1xf32>
    %72 = arith.mulf %69, %69 : vector<16x1xf32>
    %73 = arith.subf %71, %72 : vector<16x1xf32>
    %cst_35 = arith.constant 9.99999974E-6 : f32
    %74 = vector.broadcast %cst_35 : f32 to vector<16x1xf32>
    %75 = arith.addf %73, %74 : vector<16x1xf32>
    %76 = math.rsqrt %75 : vector<16x1xf32>
    %77 = vector.broadcast %69 : vector<16x1xf32> to vector<16x64xf32>
    %78 = arith.subf %62, %77 : vector<16x64xf32>
    %79 = vector.broadcast %76 : vector<16x1xf32> to vector<16x64xf32>
    %80 = arith.mulf %78, %79 : vector<16x64xf32>
    %81 = vector.broadcast %12 : vector<1x64xf32> to vector<16x64xf32>
    %82 = arith.mulf %80, %81 : vector<16x64xf32>
    %83 = vector.broadcast %14 : vector<1x64xf32> to vector<16x64xf32>
    %84 = arith.addf %82, %83 : vector<16x64xf32>
    %85 = arith.addf %15, %84 : vector<16x64xf32>
    %c0_36 = arith.constant 0 : index
    %c0_37 = arith.constant 0 : index
    %86 = vector.load %arg17[%c0_36, %c0_37] : memref<16x64xf32, #tpu.memory_space<vmem>>, vector<16x64xf32>
    tpu.vector_store %arg17[%c0_36, %c0_37], %85 {strides = array<i32>} : memref<16x64xf32, #tpu.memory_space<vmem>>, vector<16x64xf32>,
    %c3_i32 = arith.constant 3 : i32
    %87 = arith.cmpi eq, %arg1, %c3_i32 : i32
    %88 = arith.extui %87 : i1 to i32
    %c0_i32_38 = arith.constant 0 : i32
    %89 = arith.cmpi ne, %88, %c0_i32_38 : i32
    scf.if %89 {
      %c0_39 = arith.constant 0 : index
      %c0_40 = arith.constant 0 : index
      %90 = vector.load %arg8[%c0_39, %c0_40] : memref<1x64xf32, #tpu.memory_space<vmem>>, vector<1x64xf32>
      %c0_41 = arith.constant 0 : index
      %c0_42 = arith.constant 0 : index
      %91 = vector.load %arg9[%c0_41, %c0_42] : memref<1x64xf32, #tpu.memory_space<vmem>>, vector<1x64xf32>
      %cst_43 = arith.constant dense<0.000000e+00> : vector<16xf32>
      %92 = vector.multi_reduction <add>, %85, %cst_43 [1] : vector<16x64xf32> to vector<16xf32>
      %93 = vector.shape_cast %92 : vector<16xf32> to vector<16x1xf32>
      %94 = arith.mulf %85, %85 : vector<16x64xf32>
      %cst_44 = arith.constant dense<0.000000e+00> : vector<16xf32>
      %95 = vector.multi_reduction <add>, %94, %cst_44 [1] : vector<16x64xf32> to vector<16xf32>
      %96 = vector.shape_cast %95 : vector<16xf32> to vector<16x1xf32>
      %cst_45 = arith.constant 1.562500e-02 : f32
      %97 = vector.broadcast %cst_45 : f32 to vector<16x1xf32>
      %98 = arith.mulf %93, %97 : vector<16x1xf32>
      %cst_46 = arith.constant 1.562500e-02 : f32
      %99 = vector.broadcast %cst_46 : f32 to vector<16x1xf32>
      %100 = arith.mulf %96, %99 : vector<16x1xf32>
      %101 = arith.mulf %98, %98 : vector<16x1xf32>
      %102 = arith.subf %100, %101 : vector<16x1xf32>
      %cst_47 = arith.constant 9.99999974E-6 : f32
      %103 = vector.broadcast %cst_47 : f32 to vector<16x1xf32>
      %104 = arith.addf %102, %103 : vector<16x1xf32>
      %105 = math.rsqrt %104 : vector<16x1xf32>
      %106 = vector.broadcast %98 : vector<16x1xf32> to vector<16x64xf32>
      %107 = arith.subf %85, %106 : vector<16x64xf32>
      %108 = vector.broadcast %105 : vector<16x1xf32> to vector<16x64xf32>
      %109 = arith.mulf %107, %108 : vector<16x64xf32>
      %110 = vector.broadcast %90 : vector<1x64xf32> to vector<16x64xf32>
      %111 = arith.mulf %109, %110 : vector<16x64xf32>
      %112 = vector.broadcast %91 : vector<1x64xf32> to vector<16x64xf32>
      %113 = arith.addf %111, %112 : vector<16x64xf32>
      %114 = arith.truncf %113 : vector<16x64xf32> to vector<16x64xbf16>
      %c0_48 = arith.constant 0 : index
      %c0_49 = arith.constant 0 : index
      %115 = vector.load %arg10[%c0_48, %c0_49] : memref<64x32xbf16, #tpu.memory_space<vmem>>, vector<64x32xbf16>
      %cst_50 = arith.constant dense<0.000000e+00> : vector<16x32xf32>
      %116 = tpu.matmul %114, %115, %cst_50 {dimension_numbers = #tpu.dot_dimension_numbers<[1], [0], [0], [1], [0, 0, 1, 1], [], []>} : vector<16x64xbf16>, vector<64x32xbf16>, vector<16x32xf32> -> vector<16x32xf32>
      %c0_51 = arith.constant 0 : index
      %c0_52 = arith.constant 0 : index
      %117 = vector.load %arg11[%c0_51, %c0_52] : memref<1x32xf32, #tpu.memory_space<vmem>>, vector<1x32xf32>
      %118 = vector.broadcast %117 : vector<1x32xf32> to vector<16x32xf32>
      %119 = arith.addf %116, %118 : vector<16x32xf32>
      %120 = arith.mulf %119, %119 : vector<16x32xf32>
      %121 = arith.mulf %119, %120 : vector<16x32xf32>
      %cst_53 = arith.constant 4.471500e-02 : f32
      %122 = vector.broadcast %cst_53 : f32 to vector<16x32xf32>
      %123 = arith.mulf %122, %121 : vector<16x32xf32>
      %124 = arith.addf %119, %123 : vector<16x32xf32>
      %cst_54 = arith.constant 0.797884583 : f32
      %125 = vector.broadcast %cst_54 : f32 to vector<16x32xf32>
      %126 = arith.mulf %125, %124 : vector<16x32xf32>
      %127 = math.tanh %126 : vector<16x32xf32>
      %cst_55 = arith.constant 1.000000e+00 : f32
      %128 = vector.broadcast %cst_55 : f32 to vector<16x32xf32>
      %129 = arith.addf %128, %127 : vector<16x32xf32>
      %cst_56 = arith.constant 5.000000e-01 : f32
      %130 = vector.broadcast %cst_56 : f32 to vector<16x32xf32>
      %131 = arith.mulf %130, %129 : vector<16x32xf32>
      %132 = arith.mulf %119, %131 : vector<16x32xf32>
      %133 = arith.truncf %132 : vector<16x32xf32> to vector<16x32xbf16>
      %c0_57 = arith.constant 0 : index
      %c0_58 = arith.constant 0 : index
      %134 = vector.load %arg12[%c0_57, %c0_58] : memref<32x32xbf16, #tpu.memory_space<vmem>>, vector<32x32xbf16>
      %cst_59 = arith.constant dense<0.000000e+00> : vector<16x32xf32>
      %135 = tpu.matmul %133, %134, %cst_59 {dimension_numbers = #tpu.dot_dimension_numbers<[1], [0], [0], [1], [0, 0, 1, 1], [], []>} : vector<16x32xbf16>, vector<32x32xbf16>, vector<16x32xf32> -> vector<16x32xf32>
      %c0_60 = arith.constant 0 : index
      %c0_61 = arith.constant 0 : index
      %136 = vector.load %arg13[%c0_60, %c0_61] : memref<1x32xf32, #tpu.memory_space<vmem>>, vector<1x32xf32>
      %137 = vector.broadcast %136 : vector<1x32xf32> to vector<16x32xf32>
      %138 = arith.addf %135, %137 : vector<16x32xf32>
      %c0_62 = arith.constant 0 : index
      %c0_63 = arith.constant 0 : index
      %139 = vector.load %arg14[%c0_62, %c0_63] : memref<1x32xf32, #tpu.memory_space<vmem>>, vector<1x32xf32>
      %c0_64 = arith.constant 0 : index
      %c0_65 = arith.constant 0 : index
      %140 = vector.load %arg15[%c0_64, %c0_65] : memref<1x32xf32, #tpu.memory_space<vmem>>, vector<1x32xf32>
      %cst_66 = arith.constant dense<0.000000e+00> : vector<16xf32>
      %141 = vector.multi_reduction <add>, %138, %cst_66 [1] : vector<16x32xf32> to vector<16xf32>
      %142 = vector.shape_cast %141 : vector<16xf32> to vector<16x1xf32>
      %143 = arith.mulf %138, %138 : vector<16x32xf32>
      %cst_67 = arith.constant dense<0.000000e+00> : vector<16xf32>
      %144 = vector.multi_reduction <add>, %143, %cst_67 [1] : vector<16x32xf32> to vector<16xf32>
      %145 = vector.shape_cast %144 : vector<16xf32> to vector<16x1xf32>
      %cst_68 = arith.constant 3.125000e-02 : f32
      %146 = vector.broadcast %cst_68 : f32 to vector<16x1xf32>
      %147 = arith.mulf %142, %146 : vector<16x1xf32>
      %cst_69 = arith.constant 3.125000e-02 : f32
      %148 = vector.broadcast %cst_69 : f32 to vector<16x1xf32>
      %149 = arith.mulf %145, %148 : vector<16x1xf32>
      %150 = arith.mulf %147, %147 : vector<16x1xf32>
      %151 = arith.subf %149, %150 : vector<16x1xf32>
      %cst_70 = arith.constant 9.99999974E-6 : f32
      %152 = vector.broadcast %cst_70 : f32 to vector<16x1xf32>
      %153 = arith.addf %151, %152 : vector<16x1xf32>
      %154 = math.rsqrt %153 : vector<16x1xf32>
      %155 = vector.broadcast %147 : vector<16x1xf32> to vector<16x32xf32>
      %156 = arith.subf %138, %155 : vector<16x32xf32>
      %157 = vector.broadcast %154 : vector<16x1xf32> to vector<16x32xf32>
      %158 = arith.mulf %156, %157 : vector<16x32xf32>
      %159 = vector.broadcast %139 : vector<1x32xf32> to vector<16x32xf32>
      %160 = arith.mulf %158, %159 : vector<16x32xf32>
      %161 = vector.broadcast %140 : vector<1x32xf32> to vector<16x32xf32>
      %162 = arith.addf %160, %161 : vector<16x32xf32>
      %c0_71 = arith.constant 0 : index
      %c0_72 = arith.constant 0 : index
      %163 = vector.load %arg16[%c0_71, %c0_72] : memref<16x32xf32, #tpu.memory_space<vmem>>, vector<16x32xf32>
      tpu.vector_store %arg16[%c0_71, %c0_72], %162 {strides = array<i32>} : memref<16x32xf32, #tpu.memory_space<vmem>>, vector<16x32xf32>,
    } else {
    }
    return
  }
  func.func @transform_0(%arg0: i32, %arg1: i32) -> (i32, i32) {
    %c0_i32 = arith.constant 0 : i32
    %c0_i32_0 = arith.constant 0 : i32
    return %arg0, %c0_i32 : i32, i32
  }
  func.func @transform_1(%arg0: i32, %arg1: i32) -> (i32, i32) {
    %c0_i32 = arith.constant 0 : i32
    %c0_i32_0 = arith.constant 0 : i32
    %c0_i32_1 = arith.constant 0 : i32
    return %c0_i32, %c0_i32_0 : i32, i32
  }
  func.func @transform_2(%arg0: i32, %arg1: i32) -> (i32, i32) {
    %c0_i32 = arith.constant 0 : i32
    %c0_i32_0 = arith.constant 0 : i32
    %c0_i32_1 = arith.constant 0 : i32
    return %c0_i32, %c0_i32_0 : i32, i32
  }
  func.func @transform_3(%arg0: i32, %arg1: i32) -> (i32, i32, i32) {
    %c0_i32 = arith.constant 0 : i32
    %c0_i32_0 = arith.constant 0 : i32
    %c0_i32_1 = arith.constant 0 : i32
    return %arg1, %c0_i32, %c0_i32_0 : i32, i32, i32
  }
  func.func @transform_4(%arg0: i32, %arg1: i32) -> (i32, i32, i32) {
    %c0_i32 = arith.constant 0 : i32
    %c0_i32_0 = arith.constant 0 : i32
    %c0_i32_1 = arith.constant 0 : i32
    return %arg1, %c0_i32, %c0_i32_0 : i32, i32, i32
  }
  func.func @transform_5(%arg0: i32, %arg1: i32) -> (i32, i32, i32) {
    %c0_i32 = arith.constant 0 : i32
    %c0_i32_0 = arith.constant 0 : i32
    %c0_i32_1 = arith.constant 0 : i32
    return %arg1, %c0_i32, %c0_i32_0 : i32, i32, i32
  }
  func.func @transform_6(%arg0: i32, %arg1: i32) -> (i32, i32) {
    %c0_i32 = arith.constant 0 : i32
    %c0_i32_0 = arith.constant 0 : i32
    %c0_i32_1 = arith.constant 0 : i32
    return %c0_i32, %c0_i32_0 : i32, i32
  }
  func.func @transform_7(%arg0: i32, %arg1: i32) -> (i32, i32) {
    %c0_i32 = arith.constant 0 : i32
    %c0_i32_0 = arith.constant 0 : i32
    %c0_i32_1 = arith.constant 0 : i32
    return %c0_i32, %c0_i32_0 : i32, i32
  }
  func.func @transform_8(%arg0: i32, %arg1: i32) -> (i32, i32) {
    %c0_i32 = arith.constant 0 : i32
    %c0_i32_0 = arith.constant 0 : i32
    %c0_i32_1 = arith.constant 0 : i32
    return %c0_i32, %c0_i32_0 : i32, i32
  }
  func.func @transform_9(%arg0: i32, %arg1: i32) -> (i32, i32) {
    %c0_i32 = arith.constant 0 : i32
    %c0_i32_0 = arith.constant 0 : i32
    %c0_i32_1 = arith.constant 0 : i32
    return %c0_i32, %c0_i32_0 : i32, i32
  }
  func.func @transform_10(%arg0: i32, %arg1: i32) -> (i32, i32) {
    %c0_i32 = arith.constant 0 : i32
    %c0_i32_0 = arith.constant 0 : i32
    %c0_i32_1 = arith.constant 0 : i32
    return %c0_i32, %c0_i32_0 : i32, i32
  }
  func.func @transform_11(%arg0: i32, %arg1: i32) -> (i32, i32) {
    %c0_i32 = arith.constant 0 : i32
    %c0_i32_0 = arith.constant 0 : i32
    %c0_i32_1 = arith.constant 0 : i32
    return %c0_i32, %c0_i32_0 : i32, i32
  }
  func.func @transform_12(%arg0: i32, %arg1: i32) -> (i32, i32) {
    %c0_i32 = arith.constant 0 : i32
    %c0_i32_0 = arith.constant 0 : i32
    %c0_i32_1 = arith.constant 0 : i32
    return %c0_i32, %c0_i32_0 : i32, i32
  }
  func.func @transform_13(%arg0: i32, %arg1: i32) -> (i32, i32) {
    %c0_i32 = arith.constant 0 : i32
    %c0_i32_0 = arith.constant 0 : i32
    %c0_i32_1 = arith.constant 0 : i32
    return %c0_i32, %c0_i32_0 : i32, i32
  }
  func.func @transform_14(%arg0: i32, %arg1: i32) -> (i32, i32) {
    %c0_i32 = arith.constant 0 : i32
    %c0_i32_0 = arith.constant 0 : i32
    return %arg0, %c0_i32 : i32, i32
  }
}

module attributes {stable_mosaic.version = 11 : i64} {
  func.func @projector_kernel(%arg0: i32, %arg1: i32, %arg2: memref<16x32xbf16, #tpu.memory_space<vmem>>, %arg3: memref<32x64xbf16, #tpu.memory_space<vmem>>, %arg4: memref<1x64xf32, #tpu.memory_space<vmem>>, %arg5: memref<1x64x64xbf16, #tpu.memory_space<vmem>>, %arg6: memref<1x64x64xbf16, #tpu.memory_space<vmem>>, %arg7: memref<1x6x64xf32, #tpu.memory_space<vmem>>, %arg8: memref<1x64xf32, #tpu.memory_space<vmem>>, %arg9: memref<1x64xf32, #tpu.memory_space<vmem>>, %arg10: memref<64x32xbf16, #tpu.memory_space<vmem>>, %arg11: memref<1x32xf32, #tpu.memory_space<vmem>>, %arg12: memref<32x32xbf16, #tpu.memory_space<vmem>>, %arg13: memref<1x32xf32, #tpu.memory_space<vmem>>, %arg14: memref<1x32xf32, #tpu.memory_space<vmem>>, %arg15: memref<1x32xf32, #tpu.memory_space<vmem>>, %arg16: memref<16x32xf32, #tpu.memory_space<vmem>>, %arg17: memref<16x64xf32, #tpu.memory_space<vmem>>) attributes {dimension_semantics = [#tpu.dimension_semantics<parallel>, #tpu.dimension_semantics<arbitrary>], iteration_bounds = array<i64: 1, 4>, scalar_prefetch = 0 : i64, scratch_operands = 1 : i64, tpu.core_type = #tpu.core_type<tc>, window_params = [{transform_indices = @transform_0, window_bounds = array<i64: 16, 32>}, {pipeline_mode = #tpu.pipeline_mode<synchronous>, transform_indices = @transform_1, window_bounds = array<i64: 32, 64>}, {pipeline_mode = #tpu.pipeline_mode<synchronous>, transform_indices = @transform_2, window_bounds = array<i64: 1, 64>}, {transform_indices = @transform_3, window_bounds = array<i64: 1, 64, 64>}, {transform_indices = @transform_4, window_bounds = array<i64: 1, 64, 64>}, {transform_indices = @transform_5, window_bounds = array<i64: 1, 6, 64>}, {pipeline_mode = #tpu.pipeline_mode<synchronous>, transform_indices = @transform_6, window_bounds = array<i64: 1, 64>}, {pipeline_mode = #tpu.pipeline_mode<synchronous>, transform_indices = @transform_7, window_bounds = array<i64: 1, 64>}, {pipeline_mode = #tpu.pipeline_mode<synchronous>, transform_indices = @transform_8, window_bounds = array<i64: 64, 32>}, {pipeline_mode = #tpu.pipeline_mode<synchronous>, transform_indices = @transform_9, window_bounds = array<i64: 1, 32>}, {pipeline_mode = #tpu.pipeline_mode<synchronous>, transform_indices = @transform_10, window_bounds = array<i64: 32, 32>}, {pipeline_mode = #tpu.pipeline_mode<synchronous>, transform_indices = @transform_11, window_bounds = array<i64: 1, 32>}, {pipeline_mode = #tpu.pipeline_mode<synchronous>, transform_indices = @transform_12, window_bounds = array<i64: 1, 32>}, {pipeline_mode = #tpu.pipeline_mode<synchronous>, transform_indices = @transform_13, window_bounds = array<i64: 1, 32>}, {transform_indices = @transform_14, window_bounds = array<i64: 16, 32>}]} {
    %c0_i32 = arith.constant 0 : i32
    %0 = arith.cmpi eq, %arg1, %c0_i32 : i32
    %1 = arith.extui %0 : i1 to i32
    %c0_i32_0 = arith.constant 0 : i32
    %2 = arith.cmpi ne, %1, %c0_i32_0 : i32
    scf.if %2 {
      %c0_39 = arith.constant 0 : index
      %c0_40 = arith.constant 0 : index
      %90 = vector.load %arg2[%c0_39, %c0_40] : memref<16x32xbf16, #tpu.memory_space<vmem>>, vector<16x32xbf16>
      %c0_41 = arith.constant 0 : index
      %c0_42 = arith.constant 0 : index
      %91 = vector.load %arg3[%c0_41, %c0_42] : memref<32x64xbf16, #tpu.memory_space<vmem>>, vector<32x64xbf16>
      %cst_43 = arith.constant dense<0.000000e+00> : vector<16x64xf32>
      %92 = tpu.matmul %90, %91, %cst_43 {dimension_numbers = #tpu.dot_dimension_numbers<[1], [0], [0], [1], [0, 0, 1, 1], [], []>} : vector<16x32xbf16>, vector<32x64xbf16>, vector<16x64xf32> -> vector<16x64xf32>
      %c0_44 = arith.constant 0 : index
      %c0_45 = arith.constant 0 : index
      %93 = vector.load %arg4[%c0_44, %c0_45] : memref<1x64xf32, #tpu.memory_space<vmem>>, vector<1x64xf32>
      %94 = vector.broadcast %93 : vector<1x64xf32> to vector<16x64xf32>
      %95 = arith.addf %92, %94 : vector<16x64xf32>
      %c0_46 = arith.constant 0 : index
      %c0_47 = arith.constant 0 : index
      %96 = vector.load %arg17[%c0_46, %c0_47] : memref<16x64xf32, #tpu.memory_space<vmem>>, vector<16x64xf32>
      tpu.vector_store %arg17[%c0_46, %c0_47], %95 {strides = array<i32>} : memref<16x64xf32, #tpu.memory_space<vmem>>, vector<16x64xf32>,
    } else {
    }
    %c0 = arith.constant 0 : index
    %c0_1 = arith.constant 0 : index
    %c0_2 = arith.constant 0 : index
    %3 = vector.load %arg7[%c0, %c0_1, %c0_2] : memref<1x6x64xf32, #tpu.memory_space<vmem>>, vector<1x1x64xf32>
    %4 = vector.shape_cast %3 : vector<1x1x64xf32> to vector<1x64xf32>
    %c0_3 = arith.constant 0 : index
    %c1 = arith.constant 1 : index
    %c0_4 = arith.constant 0 : index
    %5 = vector.load %arg7[%c0_3, %c1, %c0_4] : memref<1x6x64xf32, #tpu.memory_space<vmem>>, vector<1x1x64xf32>
    %6 = vector.shape_cast %5 : vector<1x1x64xf32> to vector<1x64xf32>
    %c0_5 = arith.constant 0 : index
    %c2 = arith.constant 2 : index
    %c0_6 = arith.constant 0 : index
    %7 = vector.load %arg7[%c0_5, %c2, %c0_6] : memref<1x6x64xf32, #tpu.memory_space<vmem>>, vector<1x1x64xf32>
    %8 = vector.shape_cast %7 : vector<1x1x64xf32> to vector<1x64xf32>
    %c0_7 = arith.constant 0 : index
    %c3 = arith.constant 3 : index
    %c0_8 = arith.constant 0 : index
    %9 = vector.load %arg7[%c0_7, %c3, %c0_8] : memref<1x6x64xf32, #tpu.memory_space<vmem>>, vector<1x1x64xf32>
    %10 = vector.shape_cast %9 : vector<1x1x64xf32> to vector<1x64xf32>
    %c0_9 = arith.constant 0 : index
    %c4 = arith.constant 4 : index
    %c0_10 = arith.constant 0 : index
    %11 = vector.load %arg7[%c0_9, %c4, %c0_10] : memref<1x6x64xf32, #tpu.memory_space<vmem>>, vector<1x1x64xf32>
    %12 = vector.shape_cast %11 : vector<1x1x64xf32> to vector<1x64xf32>
    %c0_11 = arith.constant 0 : index
    %c5 = arith.constant 5 : index
    %c0_12 = arith.constant 0 : index
    %13 = vector.load %arg7[%c0_11, %c5, %c0_12] : memref<1x6x64xf32, #tpu.memory_space<vmem>>, vector<1x1x64xf32>
    %14 = vector.shape_cast %13 : vector<1x1x64xf32> to vector<1x64xf32>
    %c0_13 = arith.constant 0 : index
    %c0_14 = arith.constant 0 : index
    %15 = vector.load %arg17[%c0_13, %c0_14] : memref<16x64xf32, #tpu.memory_space<vmem>>, vector<16x64xf32>
    %16 = arith.truncf %15 : vector<16x64xf32> to vector<16x64xbf16>
    %c0_15 = arith.constant 0 : index
    %c0_16 = arith.constant 0 : index
    %c0_17 = arith.constant 0 : index
    %17 = vector.load %arg5[%c0_15, %c0_16, %c0_17] : memref<1x64x64xbf16, #tpu.memory_space<vmem>>, vector<1x64x64xbf16>
    %18 = vector.shape_cast %17 : vector<1x64x64xbf16> to vector<64x64xbf16>
    %cst = arith.constant dense<0.000000e+00> : vector<16x64xf32>
    %19 = tpu.matmul %16, %18, %cst {dimension_numbers = #tpu.dot_dimension_numbers<[1], [0], [0], [1], [0, 0, 1, 1], [], []>} : vector<16x64xbf16>, vector<64x64xbf16>, vector<16x64xf32> -> vector<16x64xf32>
    %20 = vector.broadcast %4 : vector<1x64xf32> to vector<16x64xf32>
    %21 = arith.addf %19, %20 : vector<16x64xf32>
    %cst_18 = arith.constant dense<0.000000e+00> : vector<16xf32>
    %22 = vector.multi_reduction <add>, %21, %cst_18 [1] : vector<16x64xf32> to vector<16xf32>
    %23 = vector.shape_cast %22 : vector<16xf32> to vector<16x1xf32>
    %24 = arith.mulf %21, %21 : vector<16x64xf32>
    %cst_19 = arith.constant dense<0.000000e+00> : vector<16xf32>
    %25 = vector.multi_reduction <add>, %24, %cst_19 [1] : vector<16x64xf32> to vector<16xf32>
    %26 = vector.shape_cast %25 : vector<16xf32> to vector<16x1xf32>
    %cst_20 = arith.constant 1.562500e-02 : f32
    %27 = vector.broadcast %cst_20 : f32 to vector<16x1xf32>
    %28 = arith.mulf %23, %27 : vector<16x1xf32>
    %cst_21 = arith.constant 1.562500e-02 : f32
    %29 = vector.broadcast %cst_21 : f32 to vector<16x1xf32>
    %30 = arith.mulf %26, %29 : vector<16x1xf32>
    %31 = arith.mulf %28, %28 : vector<16x1xf32>
    %32 = arith.subf %30, %31 : vector<16x1xf32>
    %cst_22 = arith.constant 9.99999974E-6 : f32
    %33 = vector.broadcast %cst_22 : f32 to vector<16x1xf32>
    %34 = arith.addf %32, %33 : vector<16x1xf32>
    %35 = math.rsqrt %34 : vector<16x1xf32>
    %36 = vector.broadcast %28 : vector<16x1xf32> to vector<16x64xf32>
    %37 = arith.subf %21, %36 : vector<16x64xf32>
    %38 = vector.broadcast %35 : vector<16x1xf32> to vector<16x64xf32>
    %39 = arith.mulf %37, %38 : vector<16x64xf32>
    %40 = vector.broadcast %6 : vector<1x64xf32> to vector<16x64xf32>
    %41 = arith.mulf %39, %40 : vector<16x64xf32>
    %42 = vector.broadcast %8 : vector<1x64xf32> to vector<16x64xf32>
    %43 = arith.addf %41, %42 : vector<16x64xf32>
    %44 = arith.mulf %43, %43 : vector<16x64xf32>
    %45 = arith.mulf %43, %44 : vector<16x64xf32>
    %cst_23 = arith.constant 4.471500e-02 : f32
    %46 = vector.broadcast %cst_23 : f32 to vector<16x64xf32>
    %47 = arith.mulf %46, %45 : vector<16x64xf32>
    %48 = arith.addf %43, %47 : vector<16x64xf32>
    %cst_24 = arith.constant 0.797884583 : f32
    %49 = vector.broadcast %cst_24 : f32 to vector<16x64xf32>
    %50 = arith.mulf %49, %48 : vector<16x64xf32>
    %51 = math.tanh %50 : vector<16x64xf32>
    %cst_25 = arith.constant 1.000000e+00 : f32
    %52 = vector.broadcast %cst_25 : f32 to vector<16x64xf32>
    %53 = arith.addf %52, %51 : vector<16x64xf32>
    %cst_26 = arith.constant 5.000000e-01 : f32
    %54 = vector.broadcast %cst_26 : f32 to vector<16x64xf32>
    %55 = arith.mulf %54, %53 : vector<16x64xf32>
    %56 = arith.mulf %43, %55 : vector<16x64xf32>
    %57 = arith.truncf %56 : vector<16x64xf32> to vector<16x64xbf16>
    %c0_27 = arith.constant 0 : index
    %c0_28 = arith.constant 0 : index
    %c0_29 = arith.constant 0 : index
    %58 = vector.load %arg6[%c0_27, %c0_28, %c0_29] : memref<1x64x64xbf16, #tpu.memory_space<vmem>>, vector<1x64x64xbf16>
    %59 = vector.shape_cast %58 : vector<1x64x64xbf16> to vector<64x64xbf16>
    %cst_30 = arith.constant dense<0.000000e+00> : vector<16x64xf32>
    %60 = tpu.matmul %57, %59, %cst_30 {dimension_numbers = #tpu.dot_dimension_numbers<[1], [0], [0], [1], [0, 0, 1, 1], [], []>} : vector<16x64xbf16>, vector<64x64xbf16>, vector<16x64xf32> -> vector<16x64xf32>
    %61 = vector.broadcast %10 : vector<1x64xf32> to vector<16x64xf32>
    %62 = arith.addf %60, %61 : vector<16x64xf32>
    %cst_31 = arith.constant dense<0.000000e+00> : vector<16xf32>
    %63 = vector.multi_reduction <add>, %62, %cst_31 [1] : vector<16x64xf32> to vector<16xf32>
    %64 = vector.shape_cast %63 : vector<16xf32> to vector<16x1xf32>
    %65 = arith.mulf %62, %62 : vector<16x64xf32>
    %cst_32 = arith.constant dense<0.000000e+00> : vector<16xf32>
    %66 = vector.multi_reduction <add>, %65, %cst_32 [1] : vector<16x64xf32> to vector<16xf32>
    %67 = vector.shape_cast %66 : vector<16xf32> to vector<16x1xf32>
    %cst_33 = arith.constant 1.562500e-02 : f32
    %68 = vector.broadcast %cst_33 : f32 to vector<16x1xf32>
    %69 = arith.mulf %64, %68 : vector<16x1xf32>
    %cst_34 = arith.constant 1.562500e-02 : f32
    %70 = vector.broadcast %cst_34 : f32 to vector<16x1xf32>
    %71 = arith.mulf %67, %70 : vector<16x1xf32>
    %72 = arith.mulf %69, %69 : vector<16x1xf32>
    %73 = arith.subf %71, %72 : vector<16x1xf32>
    %cst_35 = arith.constant 9.99999974E-6 : f32
    %74 = vector.broadcast %cst_35 : f32 to vector<16x1xf32>
    %75 = arith.addf %73, %74 : vector<16x1xf32>
    %76 = math.rsqrt %75 : vector<16x1xf32>
    %77 = vector.broadcast %69 : vector<16x1xf32> to vector<16x64xf32>
    %78 = arith.subf %62, %77 : vector<16x64xf32>
    %79 = vector.broadcast %76 : vector<16x1xf32> to vector<16x64xf32>
    %80 = arith.mulf %78, %79 : vector<16x64xf32>
    %81 = vector.broadcast %12 : vector<1x64xf32> to vector<16x64xf32>
    %82 = arith.mulf %80, %81 : vector<16x64xf32>
    %83 = vector.broadcast %14 : vector<1x64xf32> to vector<16x64xf32>
    %84 = arith.addf %82, %83 : vector<16x64xf32>
    %85 = arith.addf %15, %84 : vector<16x64xf32>
    %c0_36 = arith.constant 0 : index
    %c0_37 = arith.constant 0 : index
    %86 = vector.load %arg17[%c0_36, %c0_37] : memref<16x64xf32, #tpu.memory_space<vmem>>, vector<16x64xf32>
    tpu.vector_store %arg17[%c0_36, %c0_37], %85 {strides = array<i32>} : memref<16x64xf32, #tpu.memory_space<vmem>>, vector<16x64xf32>,
    %c3_i32 = arith.constant 3 : i32
    %87 = arith.cmpi eq, %arg1, %c3_i32 : i32
    %88 = arith.extui %87 : i1 to i32
    %c0_i32_38 = arith.constant 0 : i32
    %89 = arith.cmpi ne, %88, %c0_i32_38 : i32
    scf.if %89 {
      %c0_39 = arith.constant 0 : index
      %c0_40 = arith.constant 0 : index
      %90 = vector.load %arg8[%c0_39, %c0_40] : memref<1x64xf32, #tpu.memory_space<vmem>>, vector<1x64xf32>
      %c0_41 = arith.constant 0 : index
      %c0_42 = arith.constant 0 : index
      %91 = vector.load %arg9[%c0_41, %c0_42] : memref<1x64xf32, #tpu.memory_space<vmem>>, vector<1x64xf32>
      %cst_43 = arith.constant dense<0.000000e+00> : vector<16xf32>
      %92 = vector.multi_reduction <add>, %85, %cst_43 [1] : vector<16x64xf32> to vector<16xf32>
      %93 = vector.shape_cast %92 : vector<16xf32> to vector<16x1xf32>
      %94 = arith.mulf %85, %85 : vector<16x64xf32>
      %cst_44 = arith.constant dense<0.000000e+00> : vector<16xf32>
      %95 = vector.multi_reduction <add>, %94, %cst_44 [1] : vector<16x64xf32> to vector<16xf32>
      %96 = vector.shape_cast %95 : vector<16xf32> to vector<16x1xf32>
      %cst_45 = arith.constant 1.562500e-02 : f32
      %97 = vector.broadcast %cst_45 : f32 to vector<16x1xf32>
      %98 = arith.mulf %93, %97 : vector<16x1xf32>
      %cst_46 = arith.constant 1.562500e-02 : f32
      %99 = vector.broadcast %cst_46 : f32 to vector<16x1xf32>
      %100 = arith.mulf %96, %99 : vector<16x1xf32>
      %101 = arith.mulf %98, %98 : vector<16x1xf32>
      %102 = arith.subf %100, %101 : vector<16x1xf32>
      %cst_47 = arith.constant 9.99999974E-6 : f32
      %103 = vector.broadcast %cst_47 : f32 to vector<16x1xf32>
      %104 = arith.addf %102, %103 : vector<16x1xf32>
      %105 = math.rsqrt %104 : vector<16x1xf32>
      %106 = vector.broadcast %98 : vector<16x1xf32> to vector<16x64xf32>
      %107 = arith.subf %85, %106 : vector<16x64xf32>
      %108 = vector.broadcast %105 : vector<16x1xf32> to vector<16x64xf32>
      %109 = arith.mulf %107, %108 : vector<16x64xf32>
      %110 = vector.broadcast %90 : vector<1x64xf32> to vector<16x64xf32>
      %111 = arith.mulf %109, %110 : vector<16x64xf32>
      %112 = vector.broadcast %91 : vector<1x64xf32> to vector<16x64xf32>
      %113 = arith.addf %111, %112 : vector<16x64xf32>
      %114 = arith.truncf %113 : vector<16x64xf32> to vector<16x64xbf16>
      %c0_48 = arith.constant 0 : index
      %c0_49 = arith.constant 0 : index
      %115 = vector.load %arg10[%c0_48, %c0_49] : memref<64x32xbf16, #tpu.memory_space<vmem>>, vector<64x32xbf16>
      %cst_50 = arith.constant dense<0.000000e+00> : vector<16x32xf32>
      %116 = tpu.matmul %114, %115, %cst_50 {dimension_numbers = #tpu.dot_dimension_numbers<[1], [0], [0], [1], [0, 0, 1, 1], [], []>} : vector<16x64xbf16>, vector<64x32xbf16>, vector<16x32xf32> -> vector<16x32xf32>
      %c0_51 = arith.constant 0 : index
      %c0_52 = arith.constant 0 : index
      %117 = vector.load %arg11[%c0_51, %c0_52] : memref<1x32xf32, #tpu.memory_space<vmem>>, vector<1x32xf32>
      %118 = vector.broadcast %117 : vector<1x32xf32> to vector<16x32xf32>
      %119 = arith.addf %116, %118 : vector<16x32xf32>
      %120 = arith.mulf %119, %119 : vector<16x32xf32>
      %121 = arith.mulf %119, %120 : vector<16x32xf32>
      %cst_53 = arith.constant 4.471500e-02 : f32
      %122 = vector.broadcast %cst_53 : f32 to vector<16x32xf32>
      %123 = arith.mulf %122, %121 : vector<16x32xf32>
      %124 = arith.addf %119, %123 : vector<16x32xf32>
      %cst_54 = arith.constant 0.797884583 : f32
      %125 = vector.broadcast %cst_54 : f32 to vector<16x32xf32>
      %126 = arith.mulf %125, %124 : vector<16x32xf32>
      %127 = math.tanh %126 : vector<16x32xf32>
      %cst_55 = arith.constant 1.000000e+00 : f32
      %128 = vector.broadcast %cst_55 : f32 to vector<16x32xf32>
      %129 = arith.addf %128, %127 : vector<16x32xf32>
      %cst_56 = arith.constant 5.000000e-01 : f32
      %130 = vector.broadcast %cst_56 : f32 to vector<16x32xf32>
      %131 = arith.mulf %130, %129 : vector<16x32xf32>
      %132 = arith.mulf %119, %131 : vector<16x32xf32>
      %133 = arith.truncf %132 : vector<16x32xf32> to vector<16x32xbf16>
      %c0_57 = arith.constant 0 : index
      %c0_58 = arith.constant 0 : index
      %134 = vector.load %arg12[%c0_57, %c0_58] : memref<32x32xbf16, #tpu.memory_space<vmem>>, vector<32x32xbf16>
      %cst_59 = arith.constant dense<0.000000e+00> : vector<16x32xf32>
      %135 = tpu.matmul %133, %134, %cst_59 {dimension_numbers = #tpu.dot_dimension_numbers<[1], [0], [0], [1], [0, 0, 1, 1], [], []>} : vector<16x32xbf16>, vector<32x32xbf16>, vector<16x32xf32> -> vector<16x32xf32>
      %c0_60 = arith.constant 0 : index
      %c0_61 = arith.constant 0 : index
      %136 = vector.load %arg13[%c0_60, %c0_61] : memref<1x32xf32, #tpu.memory_space<vmem>>, vector<1x32xf32>
      %137 = vector.broadcast %136 : vector<1x32xf32> to vector<16x32xf32>
      %138 = arith.addf %135, %137 : vector<16x32xf32>
      %c0_62 = arith.constant 0 : index
      %c0_63 = arith.constant 0 : index
      %139 = vector.load %arg14[%c0_62, %c0_63] : memref<1x32xf32, #tpu.memory_space<vmem>>, vector<1x32xf32>
      %c0_64 = arith.constant 0 : index
      %c0_65 = arith.constant 0 : index
      %140 = vector.load %arg15[%c0_64, %c0_65] : memref<1x32xf32, #tpu.memory_space<vmem>>, vector<1x32xf32>
      %cst_66 = arith.constant dense<0.000000e+00> : vector<16xf32>
      %141 = vector.multi_reduction <add>, %138, %cst_66 [1] : vector<16x32xf32> to vector<16xf32>
      %142 = vector.shape_cast %141 : vector<16xf32> to vector<16x1xf32>
      %143 = arith.mulf %138, %138 : vector<16x32xf32>
      %cst_67 = arith.constant dense<0.000000e+00> : vector<16xf32>
      %144 = vector.multi_reduction <add>, %143, %cst_67 [1] : vector<16x32xf32> to vector<16xf32>
      %145 = vector.shape_cast %144 : vector<16xf32> to vector<16x1xf32>
      %cst_68 = arith.constant 3.125000e-02 : f32
      %146 = vector.broadcast %cst_68 : f32 to vector<16x1xf32>
      %147 = arith.mulf %142, %146 : vector<16x1xf32>
      %cst_69 = arith.constant 3.125000e-02 : f32
      %148 = vector.broadcast %cst_69 : f32 to vector<16x1xf32>
      %149 = arith.mulf %145, %148 : vector<16x1xf32>
      %150 = arith.mulf %147, %147 : vector<16x1xf32>
      %151 = arith.subf %149, %150 : vector<16x1xf32>
      %cst_70 = arith.constant 9.99999974E-6 : f32
      %152 = vector.broadcast %cst_70 : f32 to vector<16x1xf32>
      %153 = arith.addf %151, %152 : vector<16x1xf32>
      %154 = math.rsqrt %153 : vector<16x1xf32>
      %155 = vector.broadcast %147 : vector<16x1xf32> to vector<16x32xf32>
      %156 = arith.subf %138, %155 : vector<16x32xf32>
      %157 = vector.broadcast %154 : vector<16x1xf32> to vector<16x32xf32>
      %158 = arith.mulf %156, %157 : vector<16x32xf32>
      %159 = vector.broadcast %139 : vector<1x32xf32> to vector<16x32xf32>
      %160 = arith.mulf %158, %159 : vector<16x32xf32>
      %161 = vector.broadcast %140 : vector<1x32xf32> to vector<16x32xf32>
      %162 = arith.addf %160, %161 : vector<16x32xf32>
      %c0_71 = arith.constant 0 : index
      %c0_72 = arith.constant 0 : index
      %163 = vector.load %arg16[%c0_71, %c0_72] : memref<16x32xf32, #tpu.memory_space<vmem>>, vector<16x32xf32>
      tpu.vector_store %arg16[%c0_71, %c0_72], %162 {strides = array<i32>} : memref<16x32xf32, #tpu.memory_space<vmem>>, vector<16x32xf32>,
    } else {
    }
    return
  }
  func.func @transform_0(%arg0: i32, %arg1: i32) -> (i32, i32) {
    %c0_i32 = arith.constant 0 : i32
    %c0_i32_0 = arith.constant 0 : i32
    return %arg0, %c0_i32 : i32, i32
  }
  func.func @transform_1(%arg0: i32, %arg1: i32) -> (i32, i32) {
    %c0_i32 = arith.constant 0 : i32
    %c0_i32_0 = arith.constant 0 : i32
    %c0_i32_1 = arith.constant 0 : i32
    return %c0_i32, %c0_i32_0 : i32, i32
  }
  func.func @transform_2(%arg0: i32, %arg1: i32) -> (i32, i32) {
    %c0_i32 = arith.constant 0 : i32
    %c0_i32_0 = arith.constant 0 : i32
    %c0_i32_1 = arith.constant 0 : i32
    return %c0_i32, %c0_i32_0 : i32, i32
  }
  func.func @transform_3(%arg0: i32, %arg1: i32) -> (i32, i32, i32) {
    %c0_i32 = arith.constant 0 : i32
    %c0_i32_0 = arith.constant 0 : i32
    %c0_i32_1 = arith.constant 0 : i32
    return %arg1, %c0_i32, %c0_i32_0 : i32, i32, i32
  }
  func.func @transform_4(%arg0: i32, %arg1: i32) -> (i32, i32, i32) {
    %c0_i32 = arith.constant 0 : i32
    %c0_i32_0 = arith.constant 0 : i32
    %c0_i32_1 = arith.constant 0 : i32
    return %arg1, %c0_i32, %c0_i32_0 : i32, i32, i32
  }
  func.func @transform_5(%arg0: i32, %arg1: i32) -> (i32, i32, i32) {
    %c0_i32 = arith.constant 0 : i32
    %c0_i32_0 = arith.constant 0 : i32
    %c0_i32_1 = arith.constant 0 : i32
    return %arg1, %c0_i32, %c0_i32_0 : i32, i32, i32
  }
  func.func @transform_6(%arg0: i32, %arg1: i32) -> (i32, i32) {
    %c0_i32 = arith.constant 0 : i32
    %c0_i32_0 = arith.constant 0 : i32
    %c0_i32_1 = arith.constant 0 : i32
    return %c0_i32, %c0_i32_0 : i32, i32
  }
  func.func @transform_7(%arg0: i32, %arg1: i32) -> (i32, i32) {
    %c0_i32 = arith.constant 0 : i32
    %c0_i32_0 = arith.constant 0 : i32
    %c0_i32_1 = arith.constant 0 : i32
    return %c0_i32, %c0_i32_0 : i32, i32
  }
  func.func @transform_8(%arg0: i32, %arg1: i32) -> (i32, i32) {
    %c0_i32 = arith.constant 0 : i32
    %c0_i32_0 = arith.constant 0 : i32
    %c0_i32_1 = arith.constant 0 : i32
    return %c0_i32, %c0_i32_0 : i32, i32
  }
  func.func @transform_9(%arg0: i32, %arg1: i32) -> (i32, i32) {
    %c0_i32 = arith.constant 0 : i32
    %c0_i32_0 = arith.constant 0 : i32
    %c0_i32_1 = arith.constant 0 : i32
    return %c0_i32, %c0_i32_0 : i32, i32
  }
  func.func @transform_10(%arg0: i32, %arg1: i32) -> (i32, i32) {
    %c0_i32 = arith.constant 0 : i32
    %c0_i32_0 = arith.constant 0 : i32
    %c0_i32_1 = arith.constant 0 : i32
    return %c0_i32, %c0_i32_0 : i32, i32
  }
  func.func @transform_11(%arg0: i32, %arg1: i32) -> (i32, i32) {
    %c0_i32 = arith.constant 0 : i32
    %c0_i32_0 = arith.constant 0 : i32
    %c0_i32_1 = arith.constant 0 : i32
    return %c0_i32, %c0_i32_0 : i32, i32
  }
  func.func @transform_12(%arg0: i32, %arg1: i32) -> (i32, i32) {
    %c0_i32 = arith.constant 0 : i32
    %c0_i32_0 = arith.constant 0 : i32
    %c0_i32_1 = arith.constant 0 : i32
    return %c0_i32, %c0_i32_0 : i32, i32
  }
  func.func @transform_13(%arg0: i32, %arg1: i32) -> (i32, i32) {
    %c0_i32 = arith.constant 0 : i32
    %c0_i32_0 = arith.constant 0 : i32
    %c0_i32_1 = arith.constant 0 : i32
    return %c0_i32, %c0_i32_0 : i32, i32
  }
  func.func @transform_14(%arg0: i32, %arg1: i32) -> (i32, i32) {
    %c0_i32 = arith.constant 0 : i32
    %c0_i32_0 = arith.constant 0 : i32
    return %arg0, %c0_i32 : i32, i32
  }
}

</mosaic_0001>

<bundles_post_ra>
// kernel: tpu_custom_call.1
= control target key start
LH: loop header
LB: loop body
LE: loop exit
PB: predicated region body
PF: predicated region fallthrough
CT: control target
= control target key end

     0   :  { %s1910_s0 = inlined_call_operand.vmem [shape: bf16[16,32], index: 0, kind: input, shape index: {}]   ;;  %s1911_s1 = inlined_call_operand.vmem [shape: bf16[32,64], index: 1, kind: input, shape index: {}]   ;;  %s1912_s2 = inlined_call_operand.vmem [shape: f32[1,64], index: 2, kind: input, shape index: {}]   ;;  %s1913_s3 = inlined_call_operand.hbm [shape: bf16[4,64,64], index: 3, kind: input, shape index: {}]   ;;  %s1914_s4 = inlined_call_operand.hbm [shape: bf16[4,64,64], index: 4, kind: input, shape index: {}]   ;;  %s1915_s5 = inlined_call_operand.vmem [shape: f32[4,6,64], index: 5, kind: input, shape index: {}]   ;;  %s1916_s6 = inlined_call_operand.vmem [shape: f32[1,64], index: 6, kind: input, shape index: {}]   ;;  %s1917_s7 = inlined_call_operand.vmem [shape: f32[1,64], index: 7, kind: input, shape index: {}]   ;;  %s1918_s8 = inlined_call_operand.vmem [shape: bf16[64,32], index: 8, kind: input, shape index: {}]   ;;  %s1919_s9 = inlined_call_operand.vmem [shape: f32[1,32], index: 9, kind: input, shape index: {}]   ;;  %s1920_s10 = inlined_call_operand.vmem [shape: bf16[32,32], index: 10, kind: input, shape index: {}]   ;;  %s1921_s11 = inlined_call_operand.vmem [shape: f32[1,32], index: 11, kind: input, shape index: {}]   ;;  %s1922_s12 = inlined_call_operand.vmem [shape: f32[1,32], index: 12, kind: input, shape index: {}]   ;;  %s1923_s13 = inlined_call_operand.vmem [shape: f32[1,32], index: 13, kind: input, shape index: {}]   ;;  %s1924_s14 = inlined_call_operand.hbm [shape: f32[16,32], index: 14, kind: output, shape index: {}]  }
   0x1   :  { %1930 = sst [smem:[#allocation17_spill]] %s1913_s3 }
   0x2   :  { %1931 = sst [smem:[#allocation18_spill]] %s1919_s9 }
   0x3   :  { %1932 = sst [smem:[#allocation19_spill]] %s1921_s11 }
   0x4   :  { %1933 = sst [smem:[#allocation20_spill]] %s1922_s12 }
   0x5   :  { %1934 = sst [smem:[#allocation21_spill]] %s1923_s13 }
   0x6   :  { %1935 = sst [smem:[#allocation22_spill]] %s1924_s14 }
   0x7   :  { %19 = vsyncpa [#allocation4], 0 }
   0x8   :  { %21 = vsyncpa [#allocation4 + $0x1], 0 }
   0x9   :  { %22 = vsyncpa [#allocation7], 0 }
   0xa   :  { %24 = vsyncpa [#allocation7 + $0x1], 0 }
   0xb   :  { %25 = vsyncpa [#allocation5], 0  ;;  %s1679_s29 = smov 0   ;;  %s1681_s30 = smov 0  }
   0xc   :  { %s1683_s15 = smov 0   ;;  %s1685_s16 = smov 0  }
   0xd   :  { %s1687_s17 = smov 0   ;;  %s1689_s18 = smov 0  }
   0xe LB: > { %1936 = sst [smem:[#allocation12_spill]] %s1585_s15  ;;  %s1926_s19 = sadd.s32 4294967295, %s1597_s18   ;;  %s1597_s18 = sphi %s1689_s18, %s31_s18   ;;  %s1593_s17 = sphi %s1687_s17, %s1956_s17   ;;  %s1589_s16 = sphi %s1685_s16, %s1955_s16   ;;  %s1585_s15 = sphi %s1683_s15, %s1954_s15   ;;  %s1581_s30 = sphi %s1681_s30, %s1958_s30   ;;  %s1577_s29 = sphi %s1679_s29, %s1957_s29  }
   0xf   : > { %1937 = sst [smem:[#allocation13_spill]] %s1593_s17  ;;  %s40_s20 = sadd.s32 1, %s1593_s17 }
  0x10   : > { %1938 = sst [smem:[#allocation14_spill]] %s1597_s18  ;;  %p41_p0 = scmp.ge.s32.totalorder %s40_s20, 4 }
  0x11   : > { %s118_s21 = sadd.s32 1, %s1585_s15  ;;  %p125_p1 = scmp.ne.s32.totalorder %s1585_s15, %s1581_s30 }
  0x12   : > { %p126_p2 = scmp.eq.s32.totalorder %s1597_s18, 0  ;;  %s1960_s20 = smov (%p41_p0, %s40_s20), 0 }
  0x13   : > { %1939 = sst [smem:[#allocation15_spill]] %s1960_s20  ;;  %p131_p4 = scmp.ne.s32.totalorder %s1581_s30, %s1577_s29 }
  0x14   : > { %p1715_p3 = por %p126_p2, %p125_p1  ;;  %s115_s23 = ssub.s32 %s1593_s17, %s1960_s20 }
  0x15   : > { %p132_p5 = scmp.eq.s32.totalorder %s1926_s19, 0  ;;  %p116_p6 = scmp.eq.s32.totalorder %s115_s23, 0 }
  0x16   : > { %p1358_p8 = scmp.lt.s32.totalorder %s1597_s18, 4  ;;  %s1733_s26 = sand.u32 1, %s1585_s15  }
  0x17   : > { %p1724_p7 = por %p132_p5, %p131_p4  ;;  %s1324_s27 = sshll.u32 %s1593_s17, 5 }
  0x18   : > { %s1730_s25 = scalar_select %p116_p6, %s1585_s15, %s118_s21  }
  0x19   : > { %s1235_s28 = sshll.u32 %s1733_s26, 5  ;;  %s1943_s3 = sld [smem:[#allocation17_spill]] }
  0x1a   : > { %1942 = sst [smem:[#allocation16_spill]] %s1730_s25  ;;  %s444_s13 = scalar_lea.vmem [#allocation3], %s1235_s28 }
  0x1b   : > { %s452_s23 = sshll.u32 %s444_s13, 4  ;;  %p1742_p9 = pnand %p1358_p8, %p1715_p3  ;;  %s453_s23 = int_to_ptr.vmem [resolvable:$true] %s452_s23 }
  0x1c   : > { %p1241_p10 = scmp.ge.s32.totalorder %s1597_s18, 1  ;;  %p489_p11 = scmp.lt.s32.totalorder %s1597_s18, 5 }
  0x1d   : > { %s441_s17 = scalar_lea.sflag [#allocation4], %s1733_s26  ;;  %s1599_s25 = smov 64  }
  0x1e   : > { %s1600_s15 = smov 4   ;;  %p490_p12 = pnand %p1241_p10, %p489_p11 }
  0x1f   : > { %s449_s14 = scalar_lea.hbm %s1943_s3, %s1324_s27  ;;  %s471_s20 = scalar_lea.hbm %s1914_s4, %s1324_s27 }
  0x20   : > { %s450_s19 = sshll.u32 %s449_s14, 4  ;;  %s472_s29 = sshll.u32 %s471_s20, 4  ;;  %s451_s19 = int_to_ptr.hbm [resolvable:$true] %s450_s19  ;;  %s473_s29 = int_to_ptr.hbm [resolvable:$true] %s472_s29 }
  0x21   : > { %1354 = dma.hbm_to_vmem [thread:$0]  (!%p1742_p9), %s451_s19, 512, %s453_s23, %s441_s17, %s1599_s25, %s1599_s25, %s1600_s15  }
  0x22   : > { %s466_s22 = scalar_lea.vmem [#allocation6], %s1235_s28  ;;  %s463_s12 = scalar_lea.sflag [#allocation7], %s1733_s26 }
  0x23   : > { %s474_s3 = sshll.u32 %s466_s22, 4  ;;  %493 = sbr.rel (%p490_p12) target bundleno = 1428 (0x594), region = 76  ;;  %s475_s3 = int_to_ptr.vmem [resolvable:$true] %s474_s3 }
  0x24   : > { %1357 = dma.hbm_to_vmem [thread:$0]  (!%p1742_p9), %s473_s29, 512, %s475_s3, %s463_s12, %s1599_s25, %s1599_s25, %s1600_s15  }
  0x25   : > { %s495_s18 = sand.u32 (!%p490_p12), 1, %s1581_s30  }
  0x26   : > { %s1242_s11 = sshll.u32 (!%p490_p12), %s495_s18, 5  ;;  %s496_s9 = scalar_lea.sflag (!%p490_p12), [#allocation4], %s495_s18 }
  0x27   : > { %s1758_s17 = scalar_lea.vmem (!%p490_p12), [#allocation3], %s1242_s11 }
  0x28   : > { %1564 = dma.done.wait (%p1724_p7), %s496_s9, 512  }
  0x29   : > { %1566 = vsyncadd (%p1724_p7), %s496_s9, 4294966784  ;;  %s506_s19 = scalar_lea.sflag [#allocation7], %s495_s18  ;;  %s1764_s27 = scalar_lea.vmem [#allocation6], %s1242_s11 }
  0x2a   : > { %1568 = dma.done.wait (%p1724_p7), %s506_s19, 512  }
  0x2b   : > { %1570 = vsyncadd (%p1724_p7), %s506_s19, 4294966784  ;;  %p570_p13 = scmp.lt.s32.totalorder %s1589_s16, 3  ;;  %p1245_p0 = scmp.ne.s32.totalorder %s1589_s16, 0 }
  0x2d   : > { %s571_s3 = scalar_select %p570_p13, %s1589_s16, 3 }
  0x2e   : > { %579 = sbr.rel (%p1245_p0) target bundleno = 196 (0xc4), region = 88 }
  0x2f   : > { %s1244_s12 = sshll.u32 %s571_s3, 3 }
  0x30   : > { %s1775_s26 = scalar_lea.vmem %s1915_s5, %s1244_s12 }
  0x33   : > { %v1328_v0 = vld [vmem:[%s1911_s1 + $0x8] sm:$0xff]  ;;  %v1327_v1 = vld [vmem:[%s1911_s1] sm:$0xff]  ;;  %vm607_vm0 = vcmask 261120   ;;  %vm625_vm1 = vcmask 523264  }
  0x34   : > { %617 = vmatpush.bf16.msra.mxu0 %v1328_v0  ;;  %v1326_v2 = vld [vmem:[%s1910_s0] sm:$0xff] }
  0x35   : > { %v1414_v3 = vld [vmem:[%s1912_s2] ss:$0 sm:$0xff] }
  0x38   : > { %618 = vmatpush.bf16.msra.mxu0 %v1327_v1 }
  0x3b   : > { %1258 = vmatmul.msk.bf16.vlgmr.msra.gmra.mxu0 %vm607_vm0, %v1326_v2 }
  0xb8   : > { %v620_v4 = vpop.f32.mrf.mxu0 }
  0xb9   : > { %v621_v5 = vadd.f32 %v1414_v3, %v620_v4 }
  0xbb   : > { %626 = vst.msk [vmem:[#allocation2] sm:$0xff] %vm625_vm1, %v621_v5 }
  0xc0   : > { %v622_v6 = vpop.f32.mrf.mxu0 }
  0xc1   : > { %v623_v7 = vadd.f32 %v1414_v3, %v622_v6 }
  0xc3   : > { %627 = vst.msk [vmem:[#allocation2 + $0x8] sm:$0xff] %vm625_vm1, %v623_v7 }
  0xc4 PF: > { %v1332_v8 = vld [vmem:[%s1758_s17 + $0x18] sm:$0xff]  ;;  %v1331_v9 = vld [vmem:[%s1758_s17 + $0x10] sm:$0xff]  ;;  %v1330_v10 = vld [vmem:[%s1758_s17 + $0x8] sm:$0xff]  ;;  %vm670_vm2 = vcmask 523264   ;;  %p1293_p1 = scmp.ne.s32.totalorder %s1589_s16, 3 }
  0xc5   : > { %678 = vmatpush.bf16.msra.mxu0 %v1332_v8  ;;  %v1329_v11 = vld [vmem:[%s1758_s17] sm:$0xff]  ;;  %v1794_v12 = vld [vmem:[#allocation2] sm:$0xff]  ;;  %v1336_v32 = vld [vmem:[%s1764_s27 + $0x18] sm:$0xff]  ;;  %s1945_s23 = sld [smem:[#allocation18_spill]] (!%p1293_p1) }
  0xc6   : > { %v1415_v15 = vld [vmem:[%s1775_s26] ss:$0 sm:$0xff]  ;;  %801 = vmatpush.bf16.msra.mxu1 %v1336_v32  ;;  %v1334_v40 = vld [vmem:[%s1764_s27 + $0x8] sm:$0xff]  ;;  %v1333_v44 = vld [vmem:[%s1764_s27] sm:$0xff]  ;;  %s1946_s16 = sld [smem:[#allocation19_spill]] (!%p1293_p1) }
  0xc7   : > { %v1335_v34 = vld [vmem:[%s1764_s27 + $0x10] sm:$0xff]  ;;  %s1947_s29 = sld [smem:[#allocation20_spill]] (!%p1293_p1) }
  0xc8   : > { %v1416_v53 = vld [vmem:[%s1775_s26 + $0x1] ss:$0 sm:$0xff]  ;;  %v1417_v57 = vld [vmem:[%s1775_s26 + $0x2] ss:$0 sm:$0xff]  ;;  %s1948_s19 = sld [smem:[#allocation21_spill]] (!%p1293_p1) }
  0xc9   : > { %679 = vmatpush.bf16.msra.mxu0 %v1331_v9 }
  0xca   : > { %v1796_v13 = vld [vmem:[#allocation2 + $0x8] sm:$0xff]  ;;  %802 = vmatpush.bf16.msra.mxu1 %v1335_v34 }
  0xcb   : > { %v636_v14 = vpack.c.bf16 %v1796_v13, %v1794_v12 }
  0xcd   : > { %680 = vmatpush.bf16.msra.mxu0 %v1330_v10 }
  0xce   : > { %803 = vmatpush.bf16.msra.mxu1 %v1334_v40 }
  0xd1   : > { %681 = vmatpush.bf16.msra.mxu0 %v1329_v11 }
  0xd2   : > { %804 = vmatpush.bf16.msra.mxu1 %v1333_v44 }
  0xd4   : > { %1275 = vmatmul.msk.bf16.vlgmr.msra.gmra.mxu0 %vm670_vm2, %v636_v14 }
 0x151   : > { %v683_v16 = vpop.f32.mrf.mxu0 }
 0x152   : > { %v684_v17 = vadd.f32 %v1415_v15, %v683_v16 }
 0x154   : > { %v688_v18 = vsel %vm670_vm2, %v684_v17, 0.0  ;;  %v694_v19 = vmul.f32 %v684_v17, %v684_v17 }
 0x155   : > { %689 = vadd.xlane.f32.xlu0 %v688_v18 }
 0x156   : > { %v696_v20 = vsel %vm670_vm2, %v694_v19, 0.0 }
 0x157   : > { %697 = vadd.xlane.f32.xlu1 %v696_v20 }
 0x159   : > { %v685_v21 = vpop.f32.mrf.mxu0 }
 0x15a   : > { %v686_v22 = vadd.f32 %v1415_v15, %v685_v21 }
 0x15c   : > { %v691_v23 = vsel %vm670_vm2, %v686_v22, 0.0  ;;  %v695_v24 = vmul.f32 %v686_v22, %v686_v22 }
 0x15d   : > { %692 = vadd.xlane.f32.xlu0 %v691_v23 }
 0x15e   : > { %v699_v25 = vsel %vm670_vm2, %v695_v24, 0.0 }
 0x15f   : > { %700 = vadd.xlane.f32.xlu1 %v699_v25  ;;  %v1418_v25 = vld [vmem:[%s1775_s26 + $0x3] ss:$0 sm:$0xff] }
 0x1c8   : > { %v690_v26 = vpop.xlane.xlu0 %689 }
 0x1c9   : > { %v702_v27 = vmul.f32 0.015625, %v690_v26 }
 0x1ca   : > { %v698_v28 = vpop.xlane.xlu1 %697 }
 0x1cb   : > { %v706_v29 = vmul.f32 %v702_v27, %v702_v27  ;;  %v704_v30 = vmul.f32 0.015625, %v698_v28  ;;  %v732_v52 = vsub.f32 %v684_v17, %v702_v27 }
 0x1cd   : > { %v708_v31 = vsub.f32 %v704_v30, %v706_v29 }
 0x1cf   : > { %v710_v33 = vadd.f32 1e-05, %v708_v31 }
 0x1d0   : > { %v693_v35 = vpop.xlane.xlu0 %692 }
 0x1d1   : > { %1421 = vrsqrt.f32 %v710_v33  ;;  %v703_v36 = vmul.f32 0.015625, %v693_v35  ;;  %vm718_vm4 = vweird.f32 %v710_v33 }
 0x1d2   : > { %v701_v37 = vpop.xlane.xlu1 %700 }
 0x1d3   : > { %v707_v38 = vmul.f32 %v703_v36, %v703_v36  ;;  %v705_v39 = vmul.f32 0.015625, %v701_v37  ;;  %v733_v63 = vsub.f32 %v686_v22, %v703_v36 }
 0x1d5   : > { %v709_v41 = vsub.f32 %v705_v39, %v707_v38 }
 0x1d7   : > { %v1422_v42 = vpop.eup %1421  ;;  %v711_v43 = vadd.f32 1e-05, %v709_v41 }
 0x1d8   : > { %v713_v45 = vmul.f32 %v1422_v42, %v710_v33  ;;  %vm719_vm3 = vweird.f32 %v1422_v42 }
 0x1d9   : > { %1423 = vrsqrt.f32 %v711_v43  ;;  %vm720_vm5 = vmor %vm718_vm4, %vm719_vm3  ;;  %vm728_vm7 = vweird.f32 %v711_v43 }
 0x1da   : > { %v714_v46 = vmul.f32 %v1422_v42, %v713_v45 }
 0x1dc   : > { %v715_v47 = vmul.f32 0.5, %v714_v46 }
 0x1de   : > { %v716_v48 = vsub.f32 1.5, %v715_v47 }
 0x1df   : > { %v1424_v49 = vpop.eup %1423 }
 0x1e0   : > { %v717_v50 = vmul.f32 %v1422_v42, %v716_v48  ;;  %v723_v51 = vmul.f32 %v1424_v49, %v711_v43  ;;  %vm729_vm6 = vweird.f32 %v1424_v49 }
 0x1e1   : > { %vm730_vm8 = vmor %vm728_vm7, %vm729_vm6 }
 0x1e2   : > { %v721_v54 = vsel %vm720_vm5, %v1422_v42, %v717_v50  ;;  %v724_v55 = vmul.f32 %v1424_v49, %v723_v51 }
 0x1e3   : > { %v734_v56 = vmul.f32 %v732_v52, %v721_v54 }
 0x1e4   : > { %v725_v58 = vmul.f32 0.5, %v724_v55 }
 0x1e5   : > { %v737_v59 = vmul.f32 %v1416_v53, %v734_v56 }
 0x1e6   : > { %v726_v60 = vsub.f32 1.5, %v725_v58 }
 0x1e7   : > { %v740_v61 = vadd.f32 %v1417_v57, %v737_v59  ;;  %v1419_v59 = vld [vmem:[%s1775_s26 + $0x4] ss:$0 sm:$0xff] }
 0x1e8   : > { %v727_v62 = vmul.f32 %v1424_v49, %v726_v60 }
 0x1e9   : > { %v742_v0 = vmul.f32 %v740_v61, %v740_v61 }
 0x1ea   : > { %v731_v1 = vsel %vm730_vm8, %v1424_v49, %v727_v62  ;;  %v1420_v62 = vld [vmem:[%s1775_s26 + $0x5] ss:$0 sm:$0xff] }
 0x1eb   : > { %v735_v2 = vmul.f32 %v733_v63, %v731_v1  ;;  %v744_v3 = vmul.f32 %v742_v0, %v740_v61 }
 0x1ed   : > { %v738_v4 = vmul.f32 %v1416_v53, %v735_v2  ;;  %v746_v5 = vmul.f32 0.044715, %v744_v3 }
 0x1ef   : > { %v741_v6 = vadd.f32 %v1417_v57, %v738_v4  ;;  %v748_v7 = vadd.f32 %v746_v5, %v740_v61 }
 0x1f1   : > { %v743_v8 = vmul.f32 %v741_v6, %v741_v6  ;;  %v750_v9 = vmul.f32 0.7978846, %v748_v7 }
 0x1f3   : > { %v745_v10 = vmul.f32 %v743_v8, %v741_v6  ;;  %1425 = vtanh.f32 %v750_v9 }
 0x1f5   : > { %v747_v11 = vmul.f32 0.044715, %v745_v10 }
 0x1f7   : > { %v749_v14 = vadd.f32 %v747_v11, %v741_v6 }
 0x1f9   : > { %v751_v15 = vmul.f32 0.7978846, %v749_v14  ;;  %v1426_v16 = vpop.eup %1425 }
 0x1fa   : > { %v754_v17 = vadd.f32 1.0, %v1426_v16 }
 0x1fb   : > { %1427 = vtanh.f32 %v751_v15 }
 0x1fc   : > { %v756_v20 = vmul.f32 0.5, %v754_v17 }
 0x1fe   : > { %v758_v22 = vmul.f32 %v756_v20, %v740_v61 }
 0x201   : > { %v1428_v18 = vpop.eup %1427 }
 0x202   : > { %v755_v19 = vadd.f32 1.0, %v1428_v18 }
 0x204   : > { %v757_v21 = vmul.f32 0.5, %v755_v19 }
 0x206   : > { %v759_v23 = vmul.f32 %v757_v21, %v741_v6 }
 0x208   : > { %v760_v24 = vpack.c.bf16 %v759_v23, %v758_v22 }
 0x20a   : > { %1292 = vmatmul.msk.bf16.vlgmr.msra.gmra.mxu1 %vm670_vm2, %v760_v24 }
 0x287   : > { %v806_v26 = vpop.f32.mrf.mxu1 }
 0x288   : > { %v807_v27 = vadd.f32 %v1418_v25, %v806_v26 }
 0x28a   : > { %v811_v28 = vsel %vm670_vm2, %v807_v27, 0.0  ;;  %v817_v29 = vmul.f32 %v807_v27, %v807_v27 }
 0x28b   : > { %812 = vadd.xlane.f32.xlu2 %v811_v28 }
 0x28c   : > { %v819_v30 = vsel %vm670_vm2, %v817_v29, 0.0 }
 0x28d   : > { %820 = vadd.xlane.f32.xlu0 %v819_v30 }
 0x28f   : > { %v808_v31 = vpop.f32.mrf.mxu1 }
 0x290   : > { %v809_v32 = vadd.f32 %v1418_v25, %v808_v31 }
 0x292   : > { %v814_v33 = vsel %vm670_vm2, %v809_v32, 0.0  ;;  %v818_v34 = vmul.f32 %v809_v32, %v809_v32 }
 0x293   : > { %815 = vadd.xlane.f32.xlu2 %v814_v33 }
 0x294   : > { %v822_v35 = vsel %vm670_vm2, %v818_v34, 0.0 }
 0x295   : > { %823 = vadd.xlane.f32.xlu1 %v822_v35 }
 0x2fe   : > { %v813_v36 = vpop.xlane.xlu2 %812 }
 0x2ff   : > { %v825_v37 = vmul.f32 0.015625, %v813_v36 }
 0x300   : > { %v821_v38 = vpop.xlane.xlu0 %820 }
 0x301   : > { %v829_v39 = vmul.f32 %v825_v37, %v825_v37  ;;  %v827_v40 = vmul.f32 0.015625, %v821_v38  ;;  %v855_v58 = vsub.f32 %v807_v27, %v825_v37 }
 0x303   : > { %v831_v41 = vsub.f32 %v827_v40, %v829_v39 }
 0x305   : > { %v833_v42 = vadd.f32 1e-05, %v831_v41 }
 0x306   : > { %v816_v43 = vpop.xlane.xlu2 %815 }
 0x307   : > { %1429 = vrsqrt.f32 %v833_v42  ;;  %v826_v44 = vmul.f32 0.015625, %v816_v43  ;;  %vm841_vm10 = vweird.f32 %v833_v42 }
 0x308   : > { %v824_v45 = vpop.xlane.xlu1 %823 }
 0x309   : > { %v830_v46 = vmul.f32 %v826_v44, %v826_v44  ;;  %v828_v47 = vmul.f32 0.015625, %v824_v45  ;;  %v856_v6 = vsub.f32 %v809_v32, %v826_v44 }
 0x30b   : > { %v832_v48 = vsub.f32 %v828_v47, %v830_v46 }
 0x30d   : > { %v1430_v49 = vpop.eup %1429  ;;  %v834_v50 = vadd.f32 1e-05, %v832_v48 }
 0x30e   : > { %v836_v51 = vmul.f32 %v1430_v49, %v833_v42  ;;  %vm842_vm9 = vweird.f32 %v1430_v49 }
 0x30f   : > { %1431 = vrsqrt.f32 %v834_v50  ;;  %vm843_vm11 = vmor %vm841_vm10, %vm842_vm9  ;;  %vm851_vm13 = vweird.f32 %v834_v50 }
 0x310   : > { %v837_v52 = vmul.f32 %v1430_v49, %v836_v51 }
 0x312   : > { %v838_v53 = vmul.f32 0.5, %v837_v52 }
 0x314   : > { %v839_v54 = vsub.f32 1.5, %v838_v53 }
 0x315   : > { %v1432_v55 = vpop.eup %1431 }
 0x316   : > { %v840_v56 = vmul.f32 %v1430_v49, %v839_v54  ;;  %v846_v57 = vmul.f32 %v1432_v55, %v834_v50  ;;  %vm852_vm12 = vweird.f32 %v1432_v55 }
 0x317   : > { %vm853_vm14 = vmor %vm851_vm13, %vm852_vm12 }
 0x318   : > { %v844_v60 = vsel %vm843_vm11, %v1430_v49, %v840_v56  ;;  %v847_v61 = vmul.f32 %v1432_v55, %v846_v57 }
 0x319   : > { %v857_v63 = vmul.f32 %v855_v58, %v844_v60 }
 0x31a   : > { %v848_v0 = vmul.f32 0.5, %v847_v61 }
 0x31b   : > { %v860_v1 = vmul.f32 %v1419_v59, %v857_v63 }
 0x31c   : > { %v849_v2 = vsub.f32 1.5, %v848_v0 }
 0x31d   : > { %v863_v3 = vadd.f32 %v1420_v62, %v860_v1 }
 0x31e   : > { %v850_v4 = vmul.f32 %v1432_v55, %v849_v2 }
 0x31f   : > { %v1821_v5 = vadd.f32 %v863_v3, %v1794_v12 }
 0x320   : > { %v854_v7 = vsel %vm853_vm14, %v1432_v55, %v850_v4 }
 0x321   : > { %867 = vst.msk [vmem:[#allocation2] sm:$0xff] %vm670_vm2, %v1821_v5  ;;  %v858_v8 = vmul.f32 %v856_v6, %v854_v7 }
 0x323   : > { %v861_v9 = vmul.f32 %v1419_v59, %v858_v8 }
 0x325   : > { %v864_v10 = vadd.f32 %v1420_v62, %v861_v9  ;;  %872 = sbr.rel (%p1293_p1) target bundleno = 1416 (0x588), region = 92 }
 0x327   : > { %v1826_v11 = vadd.f32 %v864_v10, %v1796_v13 }
 0x329   : > { %868 = vst.msk [vmem:[#allocation2 + $0x8] sm:$0xff] %vm670_vm2, %v1826_v11 }
 0x32a   : > { %v875_v12 = vsel %vm670_vm2, %v1821_v5, 0.0  ;;  %v881_v14 = vmul.f32 %v1821_v5, %v1821_v5  ;;  %v882_v13 = vmul.f32 %v1826_v11, %v1826_v11  ;;  %v878_v16 = vsel %vm670_vm2, %v1826_v11, 0.0  ;;  %v1340_v18 = vld [vmem:[%s1918_s8 + $0x18] sm:$0xff]  ;;  %v1339_v19 = vld [vmem:[%s1918_s8 + $0x10] sm:$0xff]  ;;  %v1338_v21 = vld [vmem:[%s1918_s8 + $0x8] sm:$0xff] }
 0x32b   : > { %876 = vadd.xlane.f32.xlu0 %v875_v12  ;;  %977 = vmatpush.bf16.msra.mxu0 %v1340_v18  ;;  %v1337_v26 = vld [vmem:[%s1918_s8] sm:$0xff]  ;;  %v1342_v61 = vld [vmem:[%s1920_s10 + $0x8] sm:$0xff] }
 0x32c   : > { %v883_v15 = vsel %vm670_vm2, %v881_v14, 0.0  ;;  %v886_v17 = vsel %vm670_vm2, %v882_v13, 0.0  ;;  %v1433_v50 = vld [vmem:[%s1916_s6] ss:$0 sm:$0xff]  ;;  %1036 = vmatpush.bf16.msra.mxu1 %v1342_v61 }
 0x32d   : > { %884 = vadd.xlane.f32.xlu1 %v883_v15  ;;  %v1434_v56 = vld [vmem:[%s1917_s7] ss:$0 sm:$0xff] }
 0x32e   : > { %v1341_v62 = vld [vmem:[%s1920_s10] sm:$0xff] }
 0x32f   : > { %978 = vmatpush.bf16.msra.mxu0 %v1339_v19  ;;  %v1435_v63 = vld [vmem:[%s1945_s23] ss:$0 sm:$0xff] }
 0x330   : > { %1037 = vmatpush.bf16.msra.mxu1 %v1341_v62 }
 0x333   : > { %879 = vadd.xlane.f32.xlu0 %v878_v16  ;;  %979 = vmatpush.bf16.msra.mxu0 %v1338_v21 }
 0x335   : > { %887 = vadd.xlane.f32.xlu1 %v886_v17 }
 0x337   : > { %980 = vmatpush.bf16.msra.mxu0 %v1337_v26 }
 0x39e   : > { %v877_v20 = vpop.xlane.xlu0 %876 }
 0x39f   : > { %v889_v22 = vmul.f32 0.015625, %v877_v20 }
 0x3a0   : > { %v885_v23 = vpop.xlane.xlu1 %884 }
 0x3a1   : > { %v893_v24 = vmul.f32 %v889_v22, %v889_v22  ;;  %v891_v25 = vmul.f32 0.015625, %v885_v23  ;;  %v919_v47 = vsub.f32 %v1821_v5, %v889_v22  ;;  %v1436_v23 = vld [vmem:[%s1946_s16] ss:$0 sm:$0xff] }
 0x3a3   : > { %v895_v27 = vsub.f32 %v891_v25, %v893_v24 }
 0x3a5   : > { %v897_v28 = vadd.f32 1e-05, %v895_v27 }
 0x3a6   : > { %v880_v29 = vpop.xlane.xlu0 %879 }
 0x3a7   : > { %1439 = vrsqrt.f32 %v897_v28  ;;  %v890_v30 = vmul.f32 0.015625, %v880_v29  ;;  %vm905_vm0 = vweird.f32 %v897_v28 }
 0x3a8   : > { %v888_v31 = vpop.xlane.xlu1 %887 }
 0x3a9   : > { %v894_v32 = vmul.f32 %v890_v30, %v890_v30  ;;  %v892_v33 = vmul.f32 0.015625, %v888_v31  ;;  %v920_v52 = vsub.f32 %v1826_v11, %v890_v30 }
 0x3ab   : > { %v896_v34 = vsub.f32 %v892_v33, %v894_v32 }
 0x3ad   : > { %v1440_v35 = vpop.eup %1439  ;;  %v898_v36 = vadd.f32 1e-05, %v896_v34 }
 0x3ae   : > { %v900_v37 = vmul.f32 %v1440_v35, %v897_v28  ;;  %vm906_vm15 = vweird.f32 %v1440_v35 }
 0x3af   : > { %1441 = vrsqrt.f32 %v898_v36  ;;  %vm907_vm1 = vmor %vm905_vm0, %vm906_vm15  ;;  %vm915_vm4 = vweird.f32 %v898_v36 }
 0x3b0   : > { %v901_v38 = vmul.f32 %v1440_v35, %v900_v37 }
 0x3b2   : > { %v902_v39 = vmul.f32 0.5, %v901_v38 }
 0x3b4   : > { %v903_v40 = vsub.f32 1.5, %v902_v39 }
 0x3b5   : > { %v1442_v41 = vpop.eup %1441 }
 0x3b6   : > { %v904_v42 = vmul.f32 %v1440_v35, %v903_v40  ;;  %v910_v43 = vmul.f32 %v1442_v41, %v898_v36  ;;  %vm916_vm3 = vweird.f32 %v1442_v41 }
 0x3b7   : > { %vm917_vm5 = vmor %vm915_vm4, %vm916_vm3 }
 0x3b8   : > { %v911_v44 = vmul.f32 %v1442_v41, %v910_v43  ;;  %v908_v46 = vsel %vm907_vm1, %v1440_v35, %v904_v42 }
 0x3b9   : > { %v921_v49 = vmul.f32 %v919_v47, %v908_v46 }
 0x3ba   : > { %v912_v45 = vmul.f32 0.5, %v911_v44 }
 0x3bb   : > { %v926_v55 = vmul.f32 %v1433_v50, %v921_v49 }
 0x3bc   : > { %v913_v48 = vsub.f32 1.5, %v912_v45 }
 0x3bd   : > { %v931_v58 = vadd.f32 %v1434_v56, %v926_v55 }
 0x3be   : > { %v914_v51 = vmul.f32 %v1442_v41, %v913_v48 }
 0x3c0   : > { %v918_v53 = vsel %vm917_vm5, %v1442_v41, %v914_v51 }
 0x3c1   : > { %v922_v54 = vmul.f32 %v920_v52, %v918_v53 }
 0x3c3   : > { %v927_v57 = vmul.f32 %v1433_v50, %v922_v54 }
 0x3c5   : > { %v932_v59 = vadd.f32 %v1434_v56, %v927_v57  ;;  %v1437_v57 = vld [vmem:[%s1947_s29] ss:$0 sm:$0xff] }
 0x3c7   : > { %v933_v60 = vpack.c.bf16 %v932_v59, %v931_v58 }
 0x3c9   : > { %1310 = vmatmul.msk.bf16.vlgmr.msra.gmra.mxu0 %vm670_vm2, %v933_v60  ;;  %vm1026_vm2 = vcmask 261120   ;;  %v1438_v60 = vld [vmem:[%s1948_s19] ss:$0 sm:$0xff] }
 0x446   : > { %v982_v0 = vpop.f32.mrf.mxu0 }
 0x447   : > { %v983_v1 = vadd.f32 %v1435_v63, %v982_v0 }
 0x449   : > { %v987_v2 = vmul.f32 %v983_v1, %v983_v1 }
 0x44b   : > { %v989_v3 = vmul.f32 %v987_v2, %v983_v1 }
 0x44d   : > { %v991_v4 = vmul.f32 0.044715, %v989_v3 }
 0x44e   : > { %v984_v5 = vpop.f32.mrf.mxu0 }
 0x44f   : > { %v993_v6 = vadd.f32 %v991_v4, %v983_v1  ;;  %v985_v7 = vadd.f32 %v1435_v63, %v984_v5 }
 0x451   : > { %v995_v8 = vmul.f32 0.7978846, %v993_v6  ;;  %v988_v9 = vmul.f32 %v985_v7, %v985_v7 }
 0x453   : > { %v990_v10 = vmul.f32 %v988_v9, %v985_v7  ;;  %1443 = vtanh.f32 %v995_v8 }
 0x455   : > { %v992_v11 = vmul.f32 0.044715, %v990_v10 }
 0x457   : > { %v994_v12 = vadd.f32 %v992_v11, %v985_v7 }
 0x459   : > { %v996_v14 = vmul.f32 0.7978846, %v994_v12  ;;  %v1444_v15 = vpop.eup %1443 }
 0x45a   : > { %v999_v13 = vadd.f32 1.0, %v1444_v15 }
 0x45b   : > { %1445 = vtanh.f32 %v996_v14 }
 0x45c   : > { %v1001_v18 = vmul.f32 0.5, %v999_v13 }
 0x45e   : > { %v1003_v20 = vmul.f32 %v1001_v18, %v983_v1 }
 0x461   : > { %v1446_v16 = vpop.eup %1445 }
 0x462   : > { %v1000_v17 = vadd.f32 1.0, %v1446_v16 }
 0x464   : > { %v1002_v19 = vmul.f32 0.5, %v1000_v17 }
 0x466   : > { %v1004_v21 = vmul.f32 %v1002_v19, %v985_v7 }
 0x468   : > { %v1005_v22 = vpack.c.bf16 %v1004_v21, %v1003_v20 }
 0x46a   : > { %1319 = vmatmul.msk.bf16.vlgmr.msra.gmra.mxu1 %vm1026_vm2, %v1005_v22 }
 0x4e7   : > { %v1039_v24 = vpop.f32.mrf.mxu1 }
 0x4e8   : > { %v1040_v25 = vadd.f32 %v1436_v23, %v1039_v24 }
 0x4ea   : > { %v1046_v26 = vsel %vm1026_vm2, %v1040_v25, 0.0  ;;  %v1052_v27 = vmul.f32 %v1040_v25, %v1040_v25 }
 0x4eb   : > { %1047 = vadd.xlane.f32.xlu2 %v1046_v26 }
 0x4ec   : > { %v1054_v28 = vsel %vm1026_vm2, %v1052_v27, 0.0 }
 0x4ed   : > { %1055 = vadd.xlane.f32.xlu0 %v1054_v28 }
 0x4ef   : > { %v1041_v29 = vpop.f32.mrf.mxu1 }
 0x4f0   : > { %v1042_v30 = vadd.f32 %v1436_v23, %v1041_v29 }
 0x4f2   : > { %v1049_v31 = vsel %vm1026_vm2, %v1042_v30, 0.0  ;;  %v1053_v32 = vmul.f32 %v1042_v30, %v1042_v30 }
 0x4f3   : > { %1050 = vadd.xlane.f32.xlu2 %v1049_v31 }
 0x4f4   : > { %v1057_v33 = vsel %vm1026_vm2, %v1053_v32, 0.0 }
 0x4f5   : > { %1058 = vadd.xlane.f32.xlu1 %v1057_v33 }
 0x55e   : > { %v1048_v34 = vpop.xlane.xlu2 %1047 }
 0x55f   : > { %v1060_v35 = vmul.f32 0.03125, %v1048_v34 }
 0x560   : > { %v1056_v36 = vpop.xlane.xlu0 %1055 }
 0x561   : > { %v1064_v37 = vmul.f32 %v1060_v35, %v1060_v35  ;;  %v1062_v38 = vmul.f32 0.03125, %v1056_v36  ;;  %v1090_v56 = vsub.f32 %v1040_v25, %v1060_v35 }
 0x563   : > { %v1066_v39 = vsub.f32 %v1062_v38, %v1064_v37 }
 0x565   : > { %v1068_v40 = vadd.f32 1e-05, %v1066_v39 }
 0x566   : > { %v1051_v41 = vpop.xlane.xlu2 %1050 }
 0x567   : > { %1447 = vrsqrt.f32 %v1068_v40  ;;  %v1061_v42 = vmul.f32 0.03125, %v1051_v41  ;;  %vm1076_vm7 = vweird.f32 %v1068_v40 }
 0x568   : > { %v1059_v43 = vpop.xlane.xlu1 %1058 }
 0x569   : > { %v1065_v44 = vmul.f32 %v1061_v42, %v1061_v42  ;;  %v1063_v45 = vmul.f32 0.03125, %v1059_v43  ;;  %v1091_v3 = vsub.f32 %v1042_v30, %v1061_v42 }
 0x56b   : > { %v1067_v46 = vsub.f32 %v1063_v45, %v1065_v44 }
 0x56d   : > { %v1448_v47 = vpop.eup %1447  ;;  %v1069_v48 = vadd.f32 1e-05, %v1067_v46 }
 0x56e   : > { %v1071_v49 = vmul.f32 %v1448_v47, %v1068_v40  ;;  %vm1077_vm6 = vweird.f32 %v1448_v47 }
 0x56f   : > { %1449 = vrsqrt.f32 %v1069_v48  ;;  %vm1078_vm8 = vmor %vm1076_vm7, %vm1077_vm6  ;;  %vm1086_vm10 = vweird.f32 %v1069_v48 }
 0x570   : > { %v1072_v50 = vmul.f32 %v1448_v47, %v1071_v49 }
 0x572   : > { %v1073_v51 = vmul.f32 0.5, %v1072_v50 }
 0x574   : > { %v1074_v52 = vsub.f32 1.5, %v1073_v51 }
 0x575   : > { %v1450_v53 = vpop.eup %1449 }
 0x576   : > { %v1075_v54 = vmul.f32 %v1448_v47, %v1074_v52  ;;  %v1081_v55 = vmul.f32 %v1450_v53, %v1069_v48  ;;  %vm1087_vm9 = vweird.f32 %v1450_v53 }
 0x577   : > { %vm1088_vm11 = vmor %vm1086_vm10, %vm1087_vm9 }
 0x578   : > { %v1079_v58 = vsel %vm1078_vm8, %v1448_v47, %v1075_v54  ;;  %v1082_v59 = vmul.f32 %v1450_v53, %v1081_v55 }
 0x579   : > { %v1092_v61 = vmul.f32 %v1090_v56, %v1079_v58 }
 0x57a   : > { %v1083_v62 = vmul.f32 0.5, %v1082_v59 }
 0x57b   : > { %v1097_v63 = vmul.f32 %v1437_v57, %v1092_v61 }
 0x57c   : > { %v1084_v0 = vsub.f32 1.5, %v1083_v62 }
 0x57d   : > { %v1102_v1 = vadd.f32 %v1438_v60, %v1097_v63 }
 0x57e   : > { %v1085_v2 = vmul.f32 %v1450_v53, %v1084_v0 }
 0x57f   : > { %1104 = vst.msk [vmem:[#allocation8] sm:$0xff] %vm1026_vm2, %v1102_v1 }
 0x580   : > { %v1089_v4 = vsel %vm1088_vm11, %v1450_v53, %v1085_v2 }
 0x581   : > { %v1093_v5 = vmul.f32 %v1091_v3, %v1089_v4 }
 0x583   : > { %v1098_v6 = vmul.f32 %v1437_v57, %v1093_v5 }
 0x585   : > { %v1103_v7 = vadd.f32 %v1438_v60, %v1098_v6 }
 0x587   : > { %1105 = vst.msk [vmem:[#allocation8 + $0x8] sm:$0xff] %vm1026_vm2, %v1103_v7 }
 0x588 PF: > { %s1949_s27 = sld [smem:[#allocation14_spill]]  ;;  %s1601_s9 = smov [#allocation8]  }
 0x589   : > { %s1951_s25 = sld [smem:[#allocation22_spill]]  ;;  %s1114_s11 = sshll.u32 %s1601_s9, 4  ;;  %s1115_s11 = int_to_ptr.vmem [resolvable:$true] %s1114_s11 }
 0x58a   : > { %s1602_s18 = smov 128   ;;  %s1603_s24 = smov 8  }
 0x58e   : > { %s1950_s3 = sadd.s32 4294967295, %s1949_s27  }
 0x58f   : > { %p1359_p2 = scmp.eq.s32.totalorder %s1950_s3, 3  ;;  %s1116_s26 = sshll.u32 %s1951_s25, 4  ;;  %s1117_s26 = int_to_ptr.hbm [resolvable:$true] %s1116_s26 }
 0x591   : > { %1348 = dma.vmem_to_hbm [thread:$0]  (%p1359_p2), %s1115_s11, 256, %s1117_s26, [#allocation5], %s1602_s18, %s1602_s18, %s1603_s24  }
 0x592   : > { %1572 = dma.done.wait (%p1359_p2), [#allocation5], 256  }
 0x593   : > { %1574 = vsyncadd (%p1359_p2), [#allocation5], 4294967040 }
 0x594 PF: > { %s1952_s28 = sld [smem:[#allocation14_spill]]  ;;  %s1957_s29 = smov %s1581_s30 }
 0x595   : > { %s1953_s23 = sld [smem:[#allocation12_spill]] }
 0x596   : > { %s1954_s15 = sld [smem:[#allocation16_spill]] }
 0x597   : > { %s1955_s16 = sld [smem:[#allocation13_spill]] }
 0x598   : > { %s1956_s17 = sld [smem:[#allocation15_spill]] }
 0x59a   : > { %s31_s18 = sadd.s32 1, %s1952_s28  }
 0x59b   : > { %p28_p3 = scmp.ge.s32.totalorder %s31_s18, 6   ;;  %s1958_s30 = smov %s1953_s23 }
 0x59d   :  { %30 = sbr.rel (!%p28_p3) target bundleno = 14 (0xe), region = 141 }
 0x5a2   :  { %1133 = vsyncpa [#allocation4], 1 }
 0x5a3   :  { %1135 = vsyncpa [#allocation4 + $0x1], 1 }
 0x5a4   :  { %1136 = vsyncpa [#allocation7], 1 }
 0x5a5   :  { %1138 = vsyncpa [#allocation7 + $0x1], 1 }
 0x5a6   :  { %1139 = vsyncpa [#allocation5], 1 }
 0x5a7   :  { %1141 = vsyncpa [#allocation5 + $0x1], 1 }

// kernel: tpu_custom_call.1
= control target key start
LH: loop header
LB: loop body
LE: loop exit
PB: predicated region body
PF: predicated region fallthrough
CT: control target
= control target key end

     0   :  { %s1910_s0 = inlined_call_operand.vmem [shape: bf16[16,32], index: 0, kind: input, shape index: {}]   ;;  %s1911_s1 = inlined_call_operand.vmem [shape: bf16[32,64], index: 1, kind: input, shape index: {}]   ;;  %s1912_s2 = inlined_call_operand.vmem [shape: f32[1,64], index: 2, kind: input, shape index: {}]   ;;  %s1913_s3 = inlined_call_operand.hbm [shape: bf16[4,64,64], index: 3, kind: input, shape index: {}]   ;;  %s1914_s4 = inlined_call_operand.hbm [shape: bf16[4,64,64], index: 4, kind: input, shape index: {}]   ;;  %s1915_s5 = inlined_call_operand.vmem [shape: f32[4,6,64], index: 5, kind: input, shape index: {}]   ;;  %s1916_s6 = inlined_call_operand.vmem [shape: f32[1,64], index: 6, kind: input, shape index: {}]   ;;  %s1917_s7 = inlined_call_operand.vmem [shape: f32[1,64], index: 7, kind: input, shape index: {}]   ;;  %s1918_s8 = inlined_call_operand.vmem [shape: bf16[64,32], index: 8, kind: input, shape index: {}]   ;;  %s1919_s9 = inlined_call_operand.vmem [shape: f32[1,32], index: 9, kind: input, shape index: {}]   ;;  %s1920_s10 = inlined_call_operand.vmem [shape: bf16[32,32], index: 10, kind: input, shape index: {}]   ;;  %s1921_s11 = inlined_call_operand.vmem [shape: f32[1,32], index: 11, kind: input, shape index: {}]   ;;  %s1922_s12 = inlined_call_operand.vmem [shape: f32[1,32], index: 12, kind: input, shape index: {}]   ;;  %s1923_s13 = inlined_call_operand.vmem [shape: f32[1,32], index: 13, kind: input, shape index: {}]   ;;  %s1924_s14 = inlined_call_operand.hbm [shape: f32[16,32], index: 14, kind: output, shape index: {}]  }
   0x1   :  { %1930 = sst [smem:[#allocation17_spill]] %s1913_s3 }
   0x2   :  { %1931 = sst [smem:[#allocation18_spill]] %s1919_s9 }
   0x3   :  { %1932 = sst [smem:[#allocation19_spill]] %s1921_s11 }
   0x4   :  { %1933 = sst [smem:[#allocation20_spill]] %s1922_s12 }
   0x5   :  { %1934 = sst [smem:[#allocation21_spill]] %s1923_s13 }
   0x6   :  { %1935 = sst [smem:[#allocation22_spill]] %s1924_s14 }
   0x7   :  { %19 = vsyncpa [#allocation4], 0 }
   0x8   :  { %21 = vsyncpa [#allocation4 + $0x1], 0 }
   0x9   :  { %22 = vsyncpa [#allocation7], 0 }
   0xa   :  { %24 = vsyncpa [#allocation7 + $0x1], 0 }
   0xb   :  { %25 = vsyncpa [#allocation5], 0  ;;  %s1679_s29 = smov 0   ;;  %s1681_s30 = smov 0  }
   0xc   :  { %s1683_s15 = smov 0   ;;  %s1685_s16 = smov 0  }
   0xd   :  { %s1687_s17 = smov 0   ;;  %s1689_s18 = smov 0  }
   0xe LB: > { %1936 = sst [smem:[#allocation12_spill]] %s1585_s15  ;;  %s1926_s19 = sadd.s32 4294967295, %s1597_s18   ;;  %s1597_s18 = sphi %s1689_s18, %s31_s18   ;;  %s1593_s17 = sphi %s1687_s17, %s1956_s17   ;;  %s1589_s16 = sphi %s1685_s16, %s1955_s16   ;;  %s1585_s15 = sphi %s1683_s15, %s1954_s15   ;;  %s1581_s30 = sphi %s1681_s30, %s1958_s30   ;;  %s1577_s29 = sphi %s1679_s29, %s1957_s29  }
   0xf   : > { %1937 = sst [smem:[#allocation13_spill]] %s1593_s17  ;;  %s40_s20 = sadd.s32 1, %s1593_s17 }
  0x10   : > { %1938 = sst [smem:[#allocation14_spill]] %s1597_s18  ;;  %p41_p0 = scmp.ge.s32.totalorder %s40_s20, 4 }
  0x11   : > { %s118_s21 = sadd.s32 1, %s1585_s15  ;;  %p125_p1 = scmp.ne.s32.totalorder %s1585_s15, %s1581_s30 }
  0x12   : > { %p126_p2 = scmp.eq.s32.totalorder %s1597_s18, 0  ;;  %s1960_s20 = smov (%p41_p0, %s40_s20), 0 }
  0x13   : > { %1939 = sst [smem:[#allocation15_spill]] %s1960_s20  ;;  %p131_p4 = scmp.ne.s32.totalorder %s1581_s30, %s1577_s29 }
  0x14   : > { %p1715_p3 = por %p126_p2, %p125_p1  ;;  %s115_s23 = ssub.s32 %s1593_s17, %s1960_s20 }
  0x15   : > { %p132_p5 = scmp.eq.s32.totalorder %s1926_s19, 0  ;;  %p116_p6 = scmp.eq.s32.totalorder %s115_s23, 0 }
  0x16   : > { %p1358_p8 = scmp.lt.s32.totalorder %s1597_s18, 4  ;;  %s1733_s26 = sand.u32 1, %s1585_s15  }
  0x17   : > { %p1724_p7 = por %p132_p5, %p131_p4  ;;  %s1324_s27 = sshll.u32 %s1593_s17, 5 }
  0x18   : > { %s1730_s25 = scalar_select %p116_p6, %s1585_s15, %s118_s21  }
  0x19   : > { %s1235_s28 = sshll.u32 %s1733_s26, 5  ;;  %s1943_s3 = sld [smem:[#allocation17_spill]] }
  0x1a   : > { %1942 = sst [smem:[#allocation16_spill]] %s1730_s25  ;;  %s444_s13 = scalar_lea.vmem [#allocation3], %s1235_s28 }
  0x1b   : > { %s452_s23 = sshll.u32 %s444_s13, 4  ;;  %p1742_p9 = pnand %p1358_p8, %p1715_p3  ;;  %s453_s23 = int_to_ptr.vmem [resolvable:$true] %s452_s23 }
  0x1c   : > { %p1241_p10 = scmp.ge.s32.totalorder %s1597_s18, 1  ;;  %p489_p11 = scmp.lt.s32.totalorder %s1597_s18, 5 }
  0x1d   : > { %s441_s17 = scalar_lea.sflag [#allocation4], %s1733_s26  ;;  %s1599_s25 = smov 64  }
  0x1e   : > { %s1600_s15 = smov 4   ;;  %p490_p12 = pnand %p1241_p10, %p489_p11 }
  0x1f   : > { %s449_s14 = scalar_lea.hbm %s1943_s3, %s1324_s27  ;;  %s471_s20 = scalar_lea.hbm %s1914_s4, %s1324_s27 }
  0x20   : > { %s450_s19 = sshll.u32 %s449_s14, 4  ;;  %s472_s29 = sshll.u32 %s471_s20, 4  ;;  %s451_s19 = int_to_ptr.hbm [resolvable:$true] %s450_s19  ;;  %s473_s29 = int_to_ptr.hbm [resolvable:$true] %s472_s29 }
  0x21   : > { %1354 = dma.hbm_to_vmem [thread:$0]  (!%p1742_p9), %s451_s19, 512, %s453_s23, %s441_s17, %s1599_s25, %s1599_s25, %s1600_s15  }
  0x22   : > { %s466_s22 = scalar_lea.vmem [#allocation6], %s1235_s28  ;;  %s463_s12 = scalar_lea.sflag [#allocation7], %s1733_s26 }
  0x23   : > { %s474_s3 = sshll.u32 %s466_s22, 4  ;;  %493 = sbr.rel (%p490_p12) target bundleno = 1428 (0x594), region = 76  ;;  %s475_s3 = int_to_ptr.vmem [resolvable:$true] %s474_s3 }
  0x24   : > { %1357 = dma.hbm_to_vmem [thread:$0]  (!%p1742_p9), %s473_s29, 512, %s475_s3, %s463_s12, %s1599_s25, %s1599_s25, %s1600_s15  }
  0x25   : > { %s495_s18 = sand.u32 (!%p490_p12), 1, %s1581_s30  }
  0x26   : > { %s1242_s11 = sshll.u32 (!%p490_p12), %s495_s18, 5  ;;  %s496_s9 = scalar_lea.sflag (!%p490_p12), [#allocation4], %s495_s18 }
  0x27   : > { %s1758_s17 = scalar_lea.vmem (!%p490_p12), [#allocation3], %s1242_s11 }
  0x28   : > { %1564 = dma.done.wait (%p1724_p7), %s496_s9, 512  }
  0x29   : > { %1566 = vsyncadd (%p1724_p7), %s496_s9, 4294966784  ;;  %s506_s19 = scalar_lea.sflag [#allocation7], %s495_s18  ;;  %s1764_s27 = scalar_lea.vmem [#allocation6], %s1242_s11 }
  0x2a   : > { %1568 = dma.done.wait (%p1724_p7), %s506_s19, 512  }
  0x2b   : > { %1570 = vsyncadd (%p1724_p7), %s506_s19, 4294966784  ;;  %p570_p13 = scmp.lt.s32.totalorder %s1589_s16, 3  ;;  %p1245_p0 = scmp.ne.s32.totalorder %s1589_s16, 0 }
  0x2d   : > { %s571_s3 = scalar_select %p570_p13, %s1589_s16, 3 }
  0x2e   : > { %579 = sbr.rel (%p1245_p0) target bundleno = 196 (0xc4), region = 88 }
  0x2f   : > { %s1244_s12 = sshll.u32 %s571_s3, 3 }
  0x30   : > { %s1775_s26 = scalar_lea.vmem %s1915_s5, %s1244_s12 }
  0x33   : > { %v1328_v0 = vld [vmem:[%s1911_s1 + $0x8] sm:$0xff]  ;;  %v1327_v1 = vld [vmem:[%s1911_s1] sm:$0xff]  ;;  %vm607_vm0 = vcmask 261120   ;;  %vm625_vm1 = vcmask 523264  }
  0x34   : > { %617 = vmatpush.bf16.msra.mxu0 %v1328_v0  ;;  %v1326_v2 = vld [vmem:[%s1910_s0] sm:$0xff] }
  0x35   : > { %v1414_v3 = vld [vmem:[%s1912_s2] ss:$0 sm:$0xff] }
  0x38   : > { %618 = vmatpush.bf16.msra.mxu0 %v1327_v1 }
  0x3b   : > { %1258 = vmatmul.msk.bf16.vlgmr.msra.gmra.mxu0 %vm607_vm0, %v1326_v2 }
  0xb8   : > { %v620_v4 = vpop.f32.mrf.mxu0 }
  0xb9   : > { %v621_v5 = vadd.f32 %v1414_v3, %v620_v4 }
  0xbb   : > { %626 = vst.msk [vmem:[#allocation2] sm:$0xff] %vm625_vm1, %v621_v5 }
  0xc0   : > { %v622_v6 = vpop.f32.mrf.mxu0 }
  0xc1   : > { %v623_v7 = vadd.f32 %v1414_v3, %v622_v6 }
  0xc3   : > { %627 = vst.msk [vmem:[#allocation2 + $0x8] sm:$0xff] %vm625_vm1, %v623_v7 }
  0xc4 PF: > { %v1332_v8 = vld [vmem:[%s1758_s17 + $0x18] sm:$0xff]  ;;  %v1331_v9 = vld [vmem:[%s1758_s17 + $0x10] sm:$0xff]  ;;  %v1330_v10 = vld [vmem:[%s1758_s17 + $0x8] sm:$0xff]  ;;  %vm670_vm2 = vcmask 523264   ;;  %p1293_p1 = scmp.ne.s32.totalorder %s1589_s16, 3 }
  0xc5   : > { %678 = vmatpush.bf16.msra.mxu0 %v1332_v8  ;;  %v1329_v11 = vld [vmem:[%s1758_s17] sm:$0xff]  ;;  %v1794_v12 = vld [vmem:[#allocation2] sm:$0xff]  ;;  %v1336_v32 = vld [vmem:[%s1764_s27 + $0x18] sm:$0xff]  ;;  %s1945_s23 = sld [smem:[#allocation18_spill]] (!%p1293_p1) }
  0xc6   : > { %v1415_v15 = vld [vmem:[%s1775_s26] ss:$0 sm:$0xff]  ;;  %801 = vmatpush.bf16.msra.mxu1 %v1336_v32  ;;  %v1334_v40 = vld [vmem:[%s1764_s27 + $0x8] sm:$0xff]  ;;  %v1333_v44 = vld [vmem:[%s1764_s27] sm:$0xff]  ;;  %s1946_s16 = sld [smem:[#allocation19_spill]] (!%p1293_p1) }
  0xc7   : > { %v1335_v34 = vld [vmem:[%s1764_s27 + $0x10] sm:$0xff]  ;;  %s1947_s29 = sld [smem:[#allocation20_spill]] (!%p1293_p1) }
  0xc8   : > { %v1416_v53 = vld [vmem:[%s1775_s26 + $0x1] ss:$0 sm:$0xff]  ;;  %v1417_v57 = vld [vmem:[%s1775_s26 + $0x2] ss:$0 sm:$0xff]  ;;  %s1948_s19 = sld [smem:[#allocation21_spill]] (!%p1293_p1) }
  0xc9   : > { %679 = vmatpush.bf16.msra.mxu0 %v1331_v9 }
  0xca   : > { %v1796_v13 = vld [vmem:[#allocation2 + $0x8] sm:$0xff]  ;;  %802 = vmatpush.bf16.msra.mxu1 %v1335_v34 }
  0xcb   : > { %v636_v14 = vpack.c.bf16 %v1796_v13, %v1794_v12 }
  0xcd   : > { %680 = vmatpush.bf16.msra.mxu0 %v1330_v10 }
  0xce   : > { %803 = vmatpush.bf16.msra.mxu1 %v1334_v40 }
  0xd1   : > { %681 = vmatpush.bf16.msra.mxu0 %v1329_v11 }
  0xd2   : > { %804 = vmatpush.bf16.msra.mxu1 %v1333_v44 }
  0xd4   : > { %1275 = vmatmul.msk.bf16.vlgmr.msra.gmra.mxu0 %vm670_vm2, %v636_v14 }
 0x151   : > { %v683_v16 = vpop.f32.mrf.mxu0 }
 0x152   : > { %v684_v17 = vadd.f32 %v1415_v15, %v683_v16 }
 0x154   : > { %v688_v18 = vsel %vm670_vm2, %v684_v17, 0.0  ;;  %v694_v19 = vmul.f32 %v684_v17, %v684_v17 }
 0x155   : > { %689 = vadd.xlane.f32.xlu0 %v688_v18 }
 0x156   : > { %v696_v20 = vsel %vm670_vm2, %v694_v19, 0.0 }
 0x157   : > { %697 = vadd.xlane.f32.xlu1 %v696_v20 }
 0x159   : > { %v685_v21 = vpop.f32.mrf.mxu0 }
 0x15a   : > { %v686_v22 = vadd.f32 %v1415_v15, %v685_v21 }
 0x15c   : > { %v691_v23 = vsel %vm670_vm2, %v686_v22, 0.0  ;;  %v695_v24 = vmul.f32 %v686_v22, %v686_v22 }
 0x15d   : > { %692 = vadd.xlane.f32.xlu0 %v691_v23 }
 0x15e   : > { %v699_v25 = vsel %vm670_vm2, %v695_v24, 0.0 }
 0x15f   : > { %700 = vadd.xlane.f32.xlu1 %v699_v25  ;;  %v1418_v25 = vld [vmem:[%s1775_s26 + $0x3] ss:$0 sm:$0xff] }
 0x1c8   : > { %v690_v26 = vpop.xlane.xlu0 %689 }
 0x1c9   : > { %v702_v27 = vmul.f32 0.015625, %v690_v26 }
 0x1ca   : > { %v698_v28 = vpop.xlane.xlu1 %697 }
 0x1cb   : > { %v706_v29 = vmul.f32 %v702_v27, %v702_v27  ;;  %v704_v30 = vmul.f32 0.015625, %v698_v28  ;;  %v732_v52 = vsub.f32 %v684_v17, %v702_v27 }
 0x1cd   : > { %v708_v31 = vsub.f32 %v704_v30, %v706_v29 }
 0x1cf   : > { %v710_v33 = vadd.f32 1e-05, %v708_v31 }
 0x1d0   : > { %v693_v35 = vpop.xlane.xlu0 %692 }
 0x1d1   : > { %1421 = vrsqrt.f32 %v710_v33  ;;  %v703_v36 = vmul.f32 0.015625, %v693_v35  ;;  %vm718_vm4 = vweird.f32 %v710_v33 }
 0x1d2   : > { %v701_v37 = vpop.xlane.xlu1 %700 }
 0x1d3   : > { %v707_v38 = vmul.f32 %v703_v36, %v703_v36  ;;  %v705_v39 = vmul.f32 0.015625, %v701_v37  ;;  %v733_v63 = vsub.f32 %v686_v22, %v703_v36 }
 0x1d5   : > { %v709_v41 = vsub.f32 %v705_v39, %v707_v38 }
 0x1d7   : > { %v1422_v42 = vpop.eup %1421  ;;  %v711_v43 = vadd.f32 1e-05, %v709_v41 }
 0x1d8   : > { %v713_v45 = vmul.f32 %v1422_v42, %v710_v33  ;;  %vm719_vm3 = vweird.f32 %v1422_v42 }
 0x1d9   : > { %1423 = vrsqrt.f32 %v711_v43  ;;  %vm720_vm5 = vmor %vm718_vm4, %vm719_vm3  ;;  %vm728_vm7 = vweird.f32 %v711_v43 }
 0x1da   : > { %v714_v46 = vmul.f32 %v1422_v42, %v713_v45 }
 0x1dc   : > { %v715_v47 = vmul.f32 0.5, %v714_v46 }
 0x1de   : > { %v716_v48 = vsub.f32 1.5, %v715_v47 }
 0x1df   : > { %v1424_v49 = vpop.eup %1423 }
 0x1e0   : > { %v717_v50 = vmul.f32 %v1422_v42, %v716_v48  ;;  %v723_v51 = vmul.f32 %v1424_v49, %v711_v43  ;;  %vm729_vm6 = vweird.f32 %v1424_v49 }
 0x1e1   : > { %vm730_vm8 = vmor %vm728_vm7, %vm729_vm6 }
 0x1e2   : > { %v721_v54 = vsel %vm720_vm5, %v1422_v42, %v717_v50  ;;  %v724_v55 = vmul.f32 %v1424_v49, %v723_v51 }
 0x1e3   : > { %v734_v56 = vmul.f32 %v732_v52, %v721_v54 }
 0x1e4   : > { %v725_v58 = vmul.f32 0.5, %v724_v55 }
 0x1e5   : > { %v737_v59 = vmul.f32 %v1416_v53, %v734_v56 }
 0x1e6   : > { %v726_v60 = vsub.f32 1.5, %v725_v58 }
 0x1e7   : > { %v740_v61 = vadd.f32 %v1417_v57, %v737_v59  ;;  %v1419_v59 = vld [vmem:[%s1775_s26 + $0x4] ss:$0 sm:$0xff] }
 0x1e8   : > { %v727_v62 = vmul.f32 %v1424_v49, %v726_v60 }
 0x1e9   : > { %v742_v0 = vmul.f32 %v740_v61, %v740_v61 }
 0x1ea   : > { %v731_v1 = vsel %vm730_vm8, %v1424_v49, %v727_v62  ;;  %v1420_v62 = vld [vmem:[%s1775_s26 + $0x5] ss:$0 sm:$0xff] }
 0x1eb   : > { %v735_v2 = vmul.f32 %v733_v63, %v731_v1  ;;  %v744_v3 = vmul.f32 %v742_v0, %v740_v61 }
 0x1ed   : > { %v738_v4 = vmul.f32 %v1416_v53, %v735_v2  ;;  %v746_v5 = vmul.f32 0.044715, %v744_v3 }
 0x1ef   : > { %v741_v6 = vadd.f32 %v1417_v57, %v738_v4  ;;  %v748_v7 = vadd.f32 %v746_v5, %v740_v61 }
 0x1f1   : > { %v743_v8 = vmul.f32 %v741_v6, %v741_v6  ;;  %v750_v9 = vmul.f32 0.7978846, %v748_v7 }
 0x1f3   : > { %v745_v10 = vmul.f32 %v743_v8, %v741_v6  ;;  %1425 = vtanh.f32 %v750_v9 }
 0x1f5   : > { %v747_v11 = vmul.f32 0.044715, %v745_v10 }
 0x1f7   : > { %v749_v14 = vadd.f32 %v747_v11, %v741_v6 }
 0x1f9   : > { %v751_v15 = vmul.f32 0.7978846, %v749_v14  ;;  %v1426_v16 = vpop.eup %1425 }
 0x1fa   : > { %v754_v17 = vadd.f32 1.0, %v1426_v16 }
 0x1fb   : > { %1427 = vtanh.f32 %v751_v15 }
 0x1fc   : > { %v756_v20 = vmul.f32 0.5, %v754_v17 }
 0x1fe   : > { %v758_v22 = vmul.f32 %v756_v20, %v740_v61 }
 0x201   : > { %v1428_v18 = vpop.eup %1427 }
 0x202   : > { %v755_v19 = vadd.f32 1.0, %v1428_v18 }
 0x204   : > { %v757_v21 = vmul.f32 0.5, %v755_v19 }
 0x206   : > { %v759_v23 = vmul.f32 %v757_v21, %v741_v6 }
 0x208   : > { %v760_v24 = vpack.c.bf16 %v759_v23, %v758_v22 }
 0x20a   : > { %1292 = vmatmul.msk.bf16.vlgmr.msra.gmra.mxu1 %vm670_vm2, %v760_v24 }
 0x287   : > { %v806_v26 = vpop.f32.mrf.mxu1 }
 0x288   : > { %v807_v27 = vadd.f32 %v1418_v25, %v806_v26 }
 0x28a   : > { %v811_v28 = vsel %vm670_vm2, %v807_v27, 0.0  ;;  %v817_v29 = vmul.f32 %v807_v27, %v807_v27 }
 0x28b   : > { %812 = vadd.xlane.f32.xlu2 %v811_v28 }
 0x28c   : > { %v819_v30 = vsel %vm670_vm2, %v817_v29, 0.0 }
 0x28d   : > { %820 = vadd.xlane.f32.xlu0 %v819_v30 }
 0x28f   : > { %v808_v31 = vpop.f32.mrf.mxu1 }
 0x290   : > { %v809_v32 = vadd.f32 %v1418_v25, %v808_v31 }
 0x292   : > { %v814_v33 = vsel %vm670_vm2, %v809_v32, 0.0  ;;  %v818_v34 = vmul.f32 %v809_v32, %v809_v32 }
 0x293   : > { %815 = vadd.xlane.f32.xlu2 %v814_v33 }
 0x294   : > { %v822_v35 = vsel %vm670_vm2, %v818_v34, 0.0 }
 0x295   : > { %823 = vadd.xlane.f32.xlu1 %v822_v35 }
 0x2fe   : > { %v813_v36 = vpop.xlane.xlu2 %812 }
 0x2ff   : > { %v825_v37 = vmul.f32 0.015625, %v813_v36 }
 0x300   : > { %v821_v38 = vpop.xlane.xlu0 %820 }
 0x301   : > { %v829_v39 = vmul.f32 %v825_v37, %v825_v37  ;;  %v827_v40 = vmul.f32 0.015625, %v821_v38  ;;  %v855_v58 = vsub.f32 %v807_v27, %v825_v37 }
 0x303   : > { %v831_v41 = vsub.f32 %v827_v40, %v829_v39 }
 0x305   : > { %v833_v42 = vadd.f32 1e-05, %v831_v41 }
 0x306   : > { %v816_v43 = vpop.xlane.xlu2 %815 }
 0x307   : > { %1429 = vrsqrt.f32 %v833_v42  ;;  %v826_v44 = vmul.f32 0.015625, %v816_v43  ;;  %vm841_vm10 = vweird.f32 %v833_v42 }
 0x308   : > { %v824_v45 = vpop.xlane.xlu1 %823 }
 0x309   : > { %v830_v46 = vmul.f32 %v826_v44, %v826_v44  ;;  %v828_v47 = vmul.f32 0.015625, %v824_v45  ;;  %v856_v6 = vsub.f32 %v809_v32, %v826_v44 }
 0x30b   : > { %v832_v48 = vsub.f32 %v828_v47, %v830_v46 }
 0x30d   : > { %v1430_v49 = vpop.eup %1429  ;;  %v834_v50 = vadd.f32 1e-05, %v832_v48 }
 0x30e   : > { %v836_v51 = vmul.f32 %v1430_v49, %v833_v42  ;;  %vm842_vm9 = vweird.f32 %v1430_v49 }
 0x30f   : > { %1431 = vrsqrt.f32 %v834_v50  ;;  %vm843_vm11 = vmor %vm841_vm10, %vm842_vm9  ;;  %vm851_vm13 = vweird.f32 %v834_v50 }
 0x310   : > { %v837_v52 = vmul.f32 %v1430_v49, %v836_v51 }
 0x312   : > { %v838_v53 = vmul.f32 0.5, %v837_v52 }
 0x314   : > { %v839_v54 = vsub.f32 1.5, %v838_v53 }
 0x315   : > { %v1432_v55 = vpop.eup %1431 }
 0x316   : > { %v840_v56 = vmul.f32 %v1430_v49, %v839_v54  ;;  %v846_v57 = vmul.f32 %v1432_v55, %v834_v50  ;;  %vm852_vm12 = vweird.f32 %v1432_v55 }
 0x317   : > { %vm853_vm14 = vmor %vm851_vm13, %vm852_vm12 }
 0x318   : > { %v844_v60 = vsel %vm843_vm11, %v1430_v49, %v840_v56  ;;  %v847_v61 = vmul.f32 %v1432_v55, %v846_v57 }
 0x319   : > { %v857_v63 = vmul.f32 %v855_v58, %v844_v60 }
 0x31a   : > { %v848_v0 = vmul.f32 0.5, %v847_v61 }
 0x31b   : > { %v860_v1 = vmul.f32 %v1419_v59, %v857_v63 }
 0x31c   : > { %v849_v2 = vsub.f32 1.5, %v848_v0 }
 0x31d   : > { %v863_v3 = vadd.f32 %v1420_v62, %v860_v1 }
 0x31e   : > { %v850_v4 = vmul.f32 %v1432_v55, %v849_v2 }
 0x31f   : > { %v1821_v5 = vadd.f32 %v863_v3, %v1794_v12 }
 0x320   : > { %v854_v7 = vsel %vm853_vm14, %v1432_v55, %v850_v4 }
 0x321   : > { %867 = vst.msk [vmem:[#allocation2] sm:$0xff] %vm670_vm2, %v1821_v5  ;;  %v858_v8 = vmul.f32 %v856_v6, %v854_v7 }
 0x323   : > { %v861_v9 = vmul.f32 %v1419_v59, %v858_v8 }
 0x325   : > { %v864_v10 = vadd.f32 %v1420_v62, %v861_v9  ;;  %872 = sbr.rel (%p1293_p1) target bundleno = 1416 (0x588), region = 92 }
 0x327   : > { %v1826_v11 = vadd.f32 %v864_v10, %v1796_v13 }
 0x329   : > { %868 = vst.msk [vmem:[#allocation2 + $0x8] sm:$0xff] %vm670_vm2, %v1826_v11 }
 0x32a   : > { %v875_v12 = vsel %vm670_vm2, %v1821_v5, 0.0  ;;  %v881_v14 = vmul.f32 %v1821_v5, %v1821_v5  ;;  %v882_v13 = vmul.f32 %v1826_v11, %v1826_v11  ;;  %v878_v16 = vsel %vm670_vm2, %v1826_v11, 0.0  ;;  %v1340_v18 = vld [vmem:[%s1918_s8 + $0x18] sm:$0xff]  ;;  %v1339_v19 = vld [vmem:[%s1918_s8 + $0x10] sm:$0xff]  ;;  %v1338_v21 = vld [vmem:[%s1918_s8 + $0x8] sm:$0xff] }
 0x32b   : > { %876 = vadd.xlane.f32.xlu0 %v875_v12  ;;  %977 = vmatpush.bf16.msra.mxu0 %v1340_v18  ;;  %v1337_v26 = vld [vmem:[%s1918_s8] sm:$0xff]  ;;  %v1342_v61 = vld [vmem:[%s1920_s10 + $0x8] sm:$0xff] }
 0x32c   : > { %v883_v15 = vsel %vm670_vm2, %v881_v14, 0.0  ;;  %v886_v17 = vsel %vm670_vm2, %v882_v13, 0.0  ;;  %v1433_v50 = vld [vmem:[%s1916_s6] ss:$0 sm:$0xff]  ;;  %1036 = vmatpush.bf16.msra.mxu1 %v1342_v61 }
 0x32d   : > { %884 = vadd.xlane.f32.xlu1 %v883_v15  ;;  %v1434_v56 = vld [vmem:[%s1917_s7] ss:$0 sm:$0xff] }
 0x32e   : > { %v1341_v62 = vld [vmem:[%s1920_s10] sm:$0xff] }
 0x32f   : > { %978 = vmatpush.bf16.msra.mxu0 %v1339_v19  ;;  %v1435_v63 = vld [vmem:[%s1945_s23] ss:$0 sm:$0xff] }
 0x330   : > { %1037 = vmatpush.bf16.msra.mxu1 %v1341_v62 }
 0x333   : > { %879 = vadd.xlane.f32.xlu0 %v878_v16  ;;  %979 = vmatpush.bf16.msra.mxu0 %v1338_v21 }
 0x335   : > { %887 = vadd.xlane.f32.xlu1 %v886_v17 }
 0x337   : > { %980 = vmatpush.bf16.msra.mxu0 %v1337_v26 }
 0x39e   : > { %v877_v20 = vpop.xlane.xlu0 %876 }
 0x39f   : > { %v889_v22 = vmul.f32 0.015625, %v877_v20 }
 0x3a0   : > { %v885_v23 = vpop.xlane.xlu1 %884 }
 0x3a1   : > { %v893_v24 = vmul.f32 %v889_v22, %v889_v22  ;;  %v891_v25 = vmul.f32 0.015625, %v885_v23  ;;  %v919_v47 = vsub.f32 %v1821_v5, %v889_v22  ;;  %v1436_v23 = vld [vmem:[%s1946_s16] ss:$0 sm:$0xff] }
 0x3a3   : > { %v895_v27 = vsub.f32 %v891_v25, %v893_v24 }
 0x3a5   : > { %v897_v28 = vadd.f32 1e-05, %v895_v27 }
 0x3a6   : > { %v880_v29 = vpop.xlane.xlu0 %879 }
 0x3a7   : > { %1439 = vrsqrt.f32 %v897_v28  ;;  %v890_v30 = vmul.f32 0.015625, %v880_v29  ;;  %vm905_vm0 = vweird.f32 %v897_v28 }
 0x3a8   : > { %v888_v31 = vpop.xlane.xlu1 %887 }
 0x3a9   : > { %v894_v32 = vmul.f32 %v890_v30, %v890_v30  ;;  %v892_v33 = vmul.f32 0.015625, %v888_v31  ;;  %v920_v52 = vsub.f32 %v1826_v11, %v890_v30 }
 0x3ab   : > { %v896_v34 = vsub.f32 %v892_v33, %v894_v32 }
 0x3ad   : > { %v1440_v35 = vpop.eup %1439  ;;  %v898_v36 = vadd.f32 1e-05, %v896_v34 }
 0x3ae   : > { %v900_v37 = vmul.f32 %v1440_v35, %v897_v28  ;;  %vm906_vm15 = vweird.f32 %v1440_v35 }
 0x3af   : > { %1441 = vrsqrt.f32 %v898_v36  ;;  %vm907_vm1 = vmor %vm905_vm0, %vm906_vm15  ;;  %vm915_vm4 = vweird.f32 %v898_v36 }
 0x3b0   : > { %v901_v38 = vmul.f32 %v1440_v35, %v900_v37 }
 0x3b2   : > { %v902_v39 = vmul.f32 0.5, %v901_v38 }
 0x3b4   : > { %v903_v40 = vsub.f32 1.5, %v902_v39 }
 0x3b5   : > { %v1442_v41 = vpop.eup %1441 }
 0x3b6   : > { %v904_v42 = vmul.f32 %v1440_v35, %v903_v40  ;;  %v910_v43 = vmul.f32 %v1442_v41, %v898_v36  ;;  %vm916_vm3 = vweird.f32 %v1442_v41 }
 0x3b7   : > { %vm917_vm5 = vmor %vm915_vm4, %vm916_vm3 }
 0x3b8   : > { %v911_v44 = vmul.f32 %v1442_v41, %v910_v43  ;;  %v908_v46 = vsel %vm907_vm1, %v1440_v35, %v904_v42 }
 0x3b9   : > { %v921_v49 = vmul.f32 %v919_v47, %v908_v46 }
 0x3ba   : > { %v912_v45 = vmul.f32 0.5, %v911_v44 }
 0x3bb   : > { %v926_v55 = vmul.f32 %v1433_v50, %v921_v49 }
 0x3bc   : > { %v913_v48 = vsub.f32 1.5, %v912_v45 }
 0x3bd   : > { %v931_v58 = vadd.f32 %v1434_v56, %v926_v55 }
 0x3be   : > { %v914_v51 = vmul.f32 %v1442_v41, %v913_v48 }
 0x3c0   : > { %v918_v53 = vsel %vm917_vm5, %v1442_v41, %v914_v51 }
 0x3c1   : > { %v922_v54 = vmul.f32 %v920_v52, %v918_v53 }
 0x3c3   : > { %v927_v57 = vmul.f32 %v1433_v50, %v922_v54 }
 0x3c5   : > { %v932_v59 = vadd.f32 %v1434_v56, %v927_v57  ;;  %v1437_v57 = vld [vmem:[%s1947_s29] ss:$0 sm:$0xff] }
 0x3c7   : > { %v933_v60 = vpack.c.bf16 %v932_v59, %v931_v58 }
 0x3c9   : > { %1310 = vmatmul.msk.bf16.vlgmr.msra.gmra.mxu0 %vm670_vm2, %v933_v60  ;;  %vm1026_vm2 = vcmask 261120   ;;  %v1438_v60 = vld [vmem:[%s1948_s19] ss:$0 sm:$0xff] }
 0x446   : > { %v982_v0 = vpop.f32.mrf.mxu0 }
 0x447   : > { %v983_v1 = vadd.f32 %v1435_v63, %v982_v0 }
 0x449   : > { %v987_v2 = vmul.f32 %v983_v1, %v983_v1 }
 0x44b   : > { %v989_v3 = vmul.f32 %v987_v2, %v983_v1 }
 0x44d   : > { %v991_v4 = vmul.f32 0.044715, %v989_v3 }
 0x44e   : > { %v984_v5 = vpop.f32.mrf.mxu0 }
 0x44f   : > { %v993_v6 = vadd.f32 %v991_v4, %v983_v1  ;;  %v985_v7 = vadd.f32 %v1435_v63, %v984_v5 }
 0x451   : > { %v995_v8 = vmul.f32 0.7978846, %v993_v6  ;;  %v988_v9 = vmul.f32 %v985_v7, %v985_v7 }
 0x453   : > { %v990_v10 = vmul.f32 %v988_v9, %v985_v7  ;;  %1443 = vtanh.f32 %v995_v8 }
 0x455   : > { %v992_v11 = vmul.f32 0.044715, %v990_v10 }
 0x457   : > { %v994_v12 = vadd.f32 %v992_v11, %v985_v7 }
 0x459   : > { %v996_v14 = vmul.f32 0.7978846, %v994_v12  ;;  %v1444_v15 = vpop.eup %1443 }
 0x45a   : > { %v999_v13 = vadd.f32 1.0, %v1444_v15 }
 0x45b   : > { %1445 = vtanh.f32 %v996_v14 }
 0x45c   : > { %v1001_v18 = vmul.f32 0.5, %v999_v13 }
 0x45e   : > { %v1003_v20 = vmul.f32 %v1001_v18, %v983_v1 }
 0x461   : > { %v1446_v16 = vpop.eup %1445 }
 0x462   : > { %v1000_v17 = vadd.f32 1.0, %v1446_v16 }
 0x464   : > { %v1002_v19 = vmul.f32 0.5, %v1000_v17 }
 0x466   : > { %v1004_v21 = vmul.f32 %v1002_v19, %v985_v7 }
 0x468   : > { %v1005_v22 = vpack.c.bf16 %v1004_v21, %v1003_v20 }
 0x46a   : > { %1319 = vmatmul.msk.bf16.vlgmr.msra.gmra.mxu1 %vm1026_vm2, %v1005_v22 }
 0x4e7   : > { %v1039_v24 = vpop.f32.mrf.mxu1 }
 0x4e8   : > { %v1040_v25 = vadd.f32 %v1436_v23, %v1039_v24 }
 0x4ea   : > { %v1046_v26 = vsel %vm1026_vm2, %v1040_v25, 0.0  ;;  %v1052_v27 = vmul.f32 %v1040_v25, %v1040_v25 }
 0x4eb   : > { %1047 = vadd.xlane.f32.xlu2 %v1046_v26 }
 0x4ec   : > { %v1054_v28 = vsel %vm1026_vm2, %v1052_v27, 0.0 }
 0x4ed   : > { %1055 = vadd.xlane.f32.xlu0 %v1054_v28 }
 0x4ef   : > { %v1041_v29 = vpop.f32.mrf.mxu1 }
 0x4f0   : > { %v1042_v30 = vadd.f32 %v1436_v23, %v1041_v29 }
 0x4f2   : > { %v1049_v31 = vsel %vm1026_vm2, %v1042_v30, 0.0  ;;  %v1053_v32 = vmul.f32 %v1042_v30, %v1042_v30 }
 0x4f3   : > { %1050 = vadd.xlane.f32.xlu2 %v1049_v31 }
 0x4f4   : > { %v1057_v33 = vsel %vm1026_vm2, %v1053_v32, 0.0 }
 0x4f5   : > { %1058 = vadd.xlane.f32.xlu1 %v1057_v33 }
 0x55e   : > { %v1048_v34 = vpop.xlane.xlu2 %1047 }
 0x55f   : > { %v1060_v35 = vmul.f32 0.03125, %v1048_v34 }
 0x560   : > { %v1056_v36 = vpop.xlane.xlu0 %1055 }
 0x561   : > { %v1064_v37 = vmul.f32 %v1060_v35, %v1060_v35  ;;  %v1062_v38 = vmul.f32 0.03125, %v1056_v36  ;;  %v1090_v56 = vsub.f32 %v1040_v25, %v1060_v35 }
 0x563   : > { %v1066_v39 = vsub.f32 %v1062_v38, %v1064_v37 }
 0x565   : > { %v1068_v40 = vadd.f32 1e-05, %v1066_v39 }
 0x566   : > { %v1051_v41 = vpop.xlane.xlu2 %1050 }
 0x567   : > { %1447 = vrsqrt.f32 %v1068_v40  ;;  %v1061_v42 = vmul.f32 0.03125, %v1051_v41  ;;  %vm1076_vm7 = vweird.f32 %v1068_v40 }
 0x568   : > { %v1059_v43 = vpop.xlane.xlu1 %1058 }
 0x569   : > { %v1065_v44 = vmul.f32 %v1061_v42, %v1061_v42  ;;  %v1063_v45 = vmul.f32 0.03125, %v1059_v43  ;;  %v1091_v3 = vsub.f32 %v1042_v30, %v1061_v42 }
 0x56b   : > { %v1067_v46 = vsub.f32 %v1063_v45, %v1065_v44 }
 0x56d   : > { %v1448_v47 = vpop.eup %1447  ;;  %v1069_v48 = vadd.f32 1e-05, %v1067_v46 }
 0x56e   : > { %v1071_v49 = vmul.f32 %v1448_v47, %v1068_v40  ;;  %vm1077_vm6 = vweird.f32 %v1448_v47 }
 0x56f   : > { %1449 = vrsqrt.f32 %v1069_v48  ;;  %vm1078_vm8 = vmor %vm1076_vm7, %vm1077_vm6  ;;  %vm1086_vm10 = vweird.f32 %v1069_v48 }
 0x570   : > { %v1072_v50 = vmul.f32 %v1448_v47, %v1071_v49 }
 0x572   : > { %v1073_v51 = vmul.f32 0.5, %v1072_v50 }
 0x574   : > { %v1074_v52 = vsub.f32 1.5, %v1073_v51 }
 0x575   : > { %v1450_v53 = vpop.eup %1449 }
 0x576   : > { %v1075_v54 = vmul.f32 %v1448_v47, %v1074_v52  ;;  %v1081_v55 = vmul.f32 %v1450_v53, %v1069_v48  ;;  %vm1087_vm9 = vweird.f32 %v1450_v53 }
 0x577   : > { %vm1088_vm11 = vmor %vm1086_vm10, %vm1087_vm9 }
 0x578   : > { %v1079_v58 = vsel %vm1078_vm8, %v1448_v47, %v1075_v54  ;;  %v1082_v59 = vmul.f32 %v1450_v53, %v1081_v55 }
 0x579   : > { %v1092_v61 = vmul.f32 %v1090_v56, %v1079_v58 }
 0x57a   : > { %v1083_v62 = vmul.f32 0.5, %v1082_v59 }
 0x57b   : > { %v1097_v63 = vmul.f32 %v1437_v57, %v1092_v61 }
 0x57c   : > { %v1084_v0 = vsub.f32 1.5, %v1083_v62 }
 0x57d   : > { %v1102_v1 = vadd.f32 %v1438_v60, %v1097_v63 }
 0x57e   : > { %v1085_v2 = vmul.f32 %v1450_v53, %v1084_v0 }
 0x57f   : > { %1104 = vst.msk [vmem:[#allocation8] sm:$0xff] %vm1026_vm2, %v1102_v1 }
 0x580   : > { %v1089_v4 = vsel %vm1088_vm11, %v1450_v53, %v1085_v2 }
 0x581   : > { %v1093_v5 = vmul.f32 %v1091_v3, %v1089_v4 }
 0x583   : > { %v1098_v6 = vmul.f32 %v1437_v57, %v1093_v5 }
 0x585   : > { %v1103_v7 = vadd.f32 %v1438_v60, %v1098_v6 }
 0x587   : > { %1105 = vst.msk [vmem:[#allocation8 + $0x8] sm:$0xff] %vm1026_vm2, %v1103_v7 }
 0x588 PF: > { %s1949_s27 = sld [smem:[#allocation14_spill]]  ;;  %s1601_s9 = smov [#allocation8]  }
 0x589   : > { %s1951_s25 = sld [smem:[#allocation22_spill]]  ;;  %s1114_s11 = sshll.u32 %s1601_s9, 4  ;;  %s1115_s11 = int_to_ptr.vmem [resolvable:$true] %s1114_s11 }
 0x58a   : > { %s1602_s18 = smov 128   ;;  %s1603_s24 = smov 8  }
 0x58e   : > { %s1950_s3 = sadd.s32 4294967295, %s1949_s27  }
 0x58f   : > { %p1359_p2 = scmp.eq.s32.totalorder %s1950_s3, 3  ;;  %s1116_s26 = sshll.u32 %s1951_s25, 4  ;;  %s1117_s26 = int_to_ptr.hbm [resolvable:$true] %s1116_s26 }
 0x591   : > { %1348 = dma.vmem_to_hbm [thread:$0]  (%p1359_p2), %s1115_s11, 256, %s1117_s26, [#allocation5], %s1602_s18, %s1602_s18, %s1603_s24  }
 0x592   : > { %1572 = dma.done.wait (%p1359_p2), [#allocation5], 256  }
 0x593   : > { %1574 = vsyncadd (%p1359_p2), [#allocation5], 4294967040 }
 0x594 PF: > { %s1952_s28 = sld [smem:[#allocation14_spill]]  ;;  %s1957_s29 = smov %s1581_s30 }
 0x595   : > { %s1953_s23 = sld [smem:[#allocation12_spill]] }
 0x596   : > { %s1954_s15 = sld [smem:[#allocation16_spill]] }
 0x597   : > { %s1955_s16 = sld [smem:[#allocation13_spill]] }
 0x598   : > { %s1956_s17 = sld [smem:[#allocation15_spill]] }
 0x59a   : > { %s31_s18 = sadd.s32 1, %s1952_s28  }
 0x59b   : > { %p28_p3 = scmp.ge.s32.totalorder %s31_s18, 6   ;;  %s1958_s30 = smov %s1953_s23 }
 0x59d   :  { %30 = sbr.rel (!%p28_p3) target bundleno = 14 (0xe), region = 141 }
 0x5a2   :  { %1133 = vsyncpa [#allocation4], 1 }
 0x5a3   :  { %1135 = vsyncpa [#allocation4 + $0x1], 1 }
 0x5a4   :  { %1136 = vsyncpa [#allocation7], 1 }
 0x5a5   :  { %1138 = vsyncpa [#allocation7 + $0x1], 1 }
 0x5a6   :  { %1139 = vsyncpa [#allocation5], 1 }
 0x5a7   :  { %1141 = vsyncpa [#allocation5 + $0x1], 1 }

</bundles_post_ra>
